<compile_context>
chip_gen: v7x
topology: tpu7x:2x2x1
jax: 0.10.0
libtpu: 0.0.40
codegen_flags: <defaults>
</compile_context>

<pallas_src>
import jax
import jax.numpy as jnp
from jax.experimental import pallas as pl
from jax.experimental.pallas import tpu as pltpu

INPUT_SIZE = 1 * 28 * 28  # 784
H1, H2, H3, H4 = 512, 256, 128, 64
_MXU_M = 256  # preferred M granularity for the 256x256 MXUs (v6e/v7x)


def _round_up(x, m):
    return ((x + m - 1) // m) * m


def _tensorcores_per_chip():
    # v7x has 2 TensorCores per chip; v5e/v6e have 1. Best-effort detection;
    # default to 1 so single-core chips never get a needless grid split.
    try:
        kind = jax.devices()[0].device_kind.lower()
    except Exception:
        return 1
    return 2 if "v7" in kind else 1


def encoder_kernel(x_ref, w1_ref, w2_ref, w3_ref, b3_ref, w4_ref, b4_ref, o_ref):
    # Whole MLP fused on VMEM-resident tiles. x arrives f32 straight from HBM
    # and is cast to bf16 on the VPU (free under layer-1 MXU work); matmul
    # operands are bf16 with f32 MXU accumulation; biases/output stay f32.
    x = x_ref[...].astype(jnp.bfloat16)
    h = jnp.maximum(
        jnp.dot(x, w1_ref[...], preferred_element_type=jnp.float32), 0.0)
    h = jnp.maximum(
        jnp.dot(h.astype(jnp.bfloat16), w2_ref[...],
                preferred_element_type=jnp.float32), 0.0)
    h = jnp.maximum(
        jnp.dot(h.astype(jnp.bfloat16), w3_ref[...],
                preferred_element_type=jnp.float32) + b3_ref[...], 0.0)
    h = jnp.maximum(
        jnp.dot(h.astype(jnp.bfloat16), w4_ref[...],
                preferred_element_type=jnp.float32) + b4_ref[...], 0.0)
    o_ref[...] = h.astype(o_ref.dtype)


def _const_spec(shape):
    # Grid-invariant operand: block index is always (0, ..., 0), so the
    # pipeline fetches it once and never re-DMAs it across grid steps.
    return pl.BlockSpec(shape, lambda i, _s=len(shape): (0,) * _s)


def _make_encoder_call(batch, tm):
    grid = (pl.cdiv(batch, tm),)  # ragged last block handled by Pallas masking
    in_specs = [
        pl.BlockSpec((tm, INPUT_SIZE), lambda i: (i, 0)),  # x tile (f32)
        _const_spec((INPUT_SIZE, H1)),                     # w1 (bf16)
        _const_spec((H1, H2)),                             # w2 (bf16)
        _const_spec((H2, H3)),                             # w3 (bf16)
        _const_spec((1, H3)),                              # b3 (f32)
        _const_spec((H3, H4)),                             # w4 (bf16)
        _const_spec((1, H4)),                              # b4 (f32)
    ]
    out_specs = pl.BlockSpec((tm, H4), lambda i: (i, 0))

    weight_elems = INPUT_SIZE * H1 + H1 * H2 + H2 * H3 + H3 * H4
    flops = 2 * batch * weight_elems
    bytes_accessed = (
        batch * INPUT_SIZE * 4     # f32 activations in (single HBM pass)
        + weight_elems * 2         # bf16 weights
        + (H3 + H4) * 4            # f32 biases
        + batch * H4 * 4           # f32 output
    )

    return pl.pallas_call(
        encoder_kernel,
        out_shape=jax.ShapeDtypeStruct((batch, H4), jnp.float32),
        grid_spec=pltpu.PrefetchScalarGridSpec(
            num_scalar_prefetch=0,
            grid=grid,
            in_specs=in_specs,
            out_specs=out_specs,
        ),
        compiler_params=pltpu.CompilerParams(
            dimension_semantics=("parallel",),
            vmem_limit_bytes=32 * 1024 * 1024,  # usage ~16 MiB at tm=1024
        ),
        cost_estimate=pl.CostEstimate(
            flops=flops, transcendentals=0, bytes_accessed=bytes_accessed),
    )


def _choose_tile(batch, tm_max):
    # Largest tile (<= tm_max) covering the batch; multiple of 256 when big
    # enough (MXU M granularity), otherwise multiple of 16 (bf16 sublanes).
    tm = min(int(tm_max), _round_up(batch, 16))
    if tm >= _MXU_M:
        tm = (tm // _MXU_M) * _MXU_M
    else:
        tm = _round_up(tm, 16)
    # Only split a single-step grid on 2-TensorCore chips (v7x), so the
    # "parallel" axis can shard across both cores; no-op on v5e/v6e.
    if _tensorcores_per_chip() >= 2 and pl.cdiv(batch, tm) < 2 and tm >= 512:
        tm //= 2
    return tm


def encoder_forward(x_nchw, params, *, tm=1024):
    """x_nchw: (B, 1, 28, 28) float32. Returns (B, 64) float32."""
    w1, w2, w3, b3, w4, b4 = params
    B = x_nchw.shape[0]
    tile = _choose_tile(B, tm)

    # Flatten exactly like torch .reshape. No host-side cast or pad of x:
    # the kernel reads f32 and casts, and Pallas masks the ragged last block.
    x = x_nchw.reshape(B, INPUT_SIZE)
    w1b, w2b, w3b, w4b = (w.astype(jnp.bfloat16) for w in (w1, w2, w3, w4))
    b3f = b3.astype(jnp.float32).reshape(1, H3)
    b4f = b4.astype(jnp.float32).reshape(1, H4)

    return _make_encoder_call(B, tile)(x, w1b, w2b, w3b, b3f, w4b, b4f)


def init_params(key):
    """Deterministic synthetic parameters matching the PyTorch module's shapes.

    nn.Linear stores weight as (out, in); here we keep them as (in, out)."""
    k1, k2, k3, k3b, k4, k4b = jax.random.split(key, 6)
    scale = 0.02
    w1 = scale * jax.random.normal(k1, (INPUT_SIZE, H1), jnp.float32)  # enc_1 (no bias)
    w2 = scale * jax.random.normal(k2, (H1, H2), jnp.float32)          # new_enc3 (no bias)
    w3 = scale * jax.random.normal(k3, (H2, H3), jnp.float32)          # new_enc4
    b3 = scale * jax.random.normal(k3b, (1, H3), jnp.float32)
    w4 = scale * jax.random.normal(k4, (H3, H4), jnp.float32)          # enc_2
    b4 = scale * jax.random.normal(k4b, (1, H4), jnp.float32)
    return (w1, w2, w3, b3, w4, b4)


def encoder_reference(x_nchw, params):
    """Pure-JAX f32 reference mirroring the PyTorch forward."""
    w1, w2, w3, b3, w4, b4 = params
    x = x_nchw.reshape(x_nchw.shape[0], INPUT_SIZE)
    h = jax.nn.relu(x @ w1)
    h = jax.nn.relu(h @ w2)
    h = jax.nn.relu(h @ w3 + b3)
    h = jax.nn.relu(h @ w4 + b4)
    return h


if __name__ == "__main__":
    key = jax.random.PRNGKey(0)
    kx, kp = jax.random.split(key)
    params = init_params(kp)

    # Test 1: tiny batch (single partial block, tile clamps near the batch).
    x_small = jax.random.normal(kx, (8, 1, 28, 28), jnp.float32)  # NCHW, like PyTorch
    out_small = jax.block_until_ready(encoder_forward(x_small, params))
    ref_small = encoder_reference(x_small, params)
    assert out_small.shape == (8, H4)
    # bf16 matmul operands with f32 accumulation -> loosened tolerance vs f32 ref.
    assert jnp.allclose(out_small, ref_small, atol=2e-2, rtol=2e-2), float(
        jnp.max(jnp.abs(out_small - ref_small)))

    # Test 2: ragged batch (not a multiple of the tile) exercising the Pallas
    # partial-block path — no host-side jnp.pad, masked final store.
    x2 = jax.random.normal(jax.random.fold_in(kx, 1), (50, 1, 28, 28), jnp.float32)
    out2 = jax.block_until_ready(encoder_forward(x2, params))
    ref2 = encoder_reference(x2, params)
    assert out2.shape == (50, H4)
    assert jnp.allclose(out2, ref2, atol=2e-2, rtol=2e-2), float(
        jnp.max(jnp.abs(out2 - ref2)))

    print("KERNEL_OK")
</pallas_src>

<mosaic_0001>
module attributes {stable_mosaic.version = 11 : i64} {
  func.func @encoder_kernel(%arg0: i32, %arg1: memref<16x784xf32, #tpu.memory_space<vmem>>, %arg2: memref<784x512xbf16, #tpu.memory_space<vmem>>, %arg3: memref<512x256xbf16, #tpu.memory_space<vmem>>, %arg4: memref<256x128xbf16, #tpu.memory_space<vmem>>, %arg5: memref<1x128xf32, #tpu.memory_space<vmem>>, %arg6: memref<128x64xbf16, #tpu.memory_space<vmem>>, %arg7: memref<1x64xf32, #tpu.memory_space<vmem>>, %arg8: memref<16x64xf32, #tpu.memory_space<vmem>>) attributes {dimension_semantics = [#tpu.dimension_semantics<parallel>], iteration_bounds = array<i64: 1>, scalar_prefetch = 0 : i64, scratch_operands = 0 : i64, tpu.core_type = #tpu.core_type<tc>, window_params = [{transform_indices = @transform_0, window_bounds = array<i64: 16, 784>}, {pipeline_mode = #tpu.pipeline_mode<synchronous>, transform_indices = @transform_1, window_bounds = array<i64: 784, 512>}, {pipeline_mode = #tpu.pipeline_mode<synchronous>, transform_indices = @transform_2, window_bounds = array<i64: 512, 256>}, {pipeline_mode = #tpu.pipeline_mode<synchronous>, transform_indices = @transform_3, window_bounds = array<i64: 256, 128>}, {pipeline_mode = #tpu.pipeline_mode<synchronous>, transform_indices = @transform_4, window_bounds = array<i64: 1, 128>}, {pipeline_mode = #tpu.pipeline_mode<synchronous>, transform_indices = @transform_5, window_bounds = array<i64: 128, 64>}, {pipeline_mode = #tpu.pipeline_mode<synchronous>, transform_indices = @transform_6, window_bounds = array<i64: 1, 64>}, {transform_indices = @transform_7, window_bounds = array<i64: 16, 64>}]} {
    %c0 = arith.constant 0 : index
    %c0_0 = arith.constant 0 : index
    %0 = vector.load %arg1[%c0, %c0_0] : memref<16x784xf32, #tpu.memory_space<vmem>>, vector<16x784xf32>
    %1 = arith.truncf %0 : vector<16x784xf32> to vector<16x784xbf16>
    %c0_1 = arith.constant 0 : index
    %c0_2 = arith.constant 0 : index
    %2 = vector.load %arg2[%c0_1, %c0_2] : memref<784x512xbf16, #tpu.memory_space<vmem>>, vector<784x512xbf16>
    %cst = arith.constant dense<0.000000e+00> : vector<16x512xf32>
    %3 = tpu.matmul %1, %2, %cst {dimension_numbers = #tpu.dot_dimension_numbers<[1], [0], [0], [1], [0, 0, 1, 1], [], []>} : vector<16x784xbf16>, vector<784x512xbf16>, vector<16x512xf32> -> vector<16x512xf32>
    %cst_3 = arith.constant 0.000000e+00 : f32
    %4 = vector.broadcast %cst_3 : f32 to vector<16x512xf32>
    %5 = arith.maximumf %3, %4 : vector<16x512xf32>
    %6 = arith.truncf %5 : vector<16x512xf32> to vector<16x512xbf16>
    %c0_4 = arith.constant 0 : index
    %c0_5 = arith.constant 0 : index
    %7 = vector.load %arg3[%c0_4, %c0_5] : memref<512x256xbf16, #tpu.memory_space<vmem>>, vector<512x256xbf16>
    %cst_6 = arith.constant dense<0.000000e+00> : vector<16x256xf32>
    %8 = tpu.matmul %6, %7, %cst_6 {dimension_numbers = #tpu.dot_dimension_numbers<[1], [0], [0], [1], [0, 0, 1, 1], [], []>} : vector<16x512xbf16>, vector<512x256xbf16>, vector<16x256xf32> -> vector<16x256xf32>
    %cst_7 = arith.constant 0.000000e+00 : f32
    %9 = vector.broadcast %cst_7 : f32 to vector<16x256xf32>
    %10 = arith.maximumf %8, %9 : vector<16x256xf32>
    %11 = arith.truncf %10 : vector<16x256xf32> to vector<16x256xbf16>
    %c0_8 = arith.constant 0 : index
    %c0_9 = arith.constant 0 : index
    %12 = vector.load %arg4[%c0_8, %c0_9] : memref<256x128xbf16, #tpu.memory_space<vmem>>, vector<256x128xbf16>
    %cst_10 = arith.constant dense<0.000000e+00> : vector<16x128xf32>
    %13 = tpu.matmul %11, %12, %cst_10 {dimension_numbers = #tpu.dot_dimension_numbers<[1], [0], [0], [1], [0, 0, 1, 1], [], []>} : vector<16x256xbf16>, vector<256x128xbf16>, vector<16x128xf32> -> vector<16x128xf32>
    %c0_11 = arith.constant 0 : index
    %c0_12 = arith.constant 0 : index
    %14 = vector.load %arg5[%c0_11, %c0_12] : memref<1x128xf32, #tpu.memory_space<vmem>>, vector<1x128xf32>
    %15 = vector.broadcast %14 : vector<1x128xf32> to vector<16x128xf32>
    %16 = arith.addf %13, %15 : vector<16x128xf32>
    %cst_13 = arith.constant 0.000000e+00 : f32
    %17 = vector.broadcast %cst_13 : f32 to vector<16x128xf32>
    %18 = arith.maximumf %16, %17 : vector<16x128xf32>
    %19 = arith.truncf %18 : vector<16x128xf32> to vector<16x128xbf16>
    %c0_14 = arith.constant 0 : index
    %c0_15 = arith.constant 0 : index
    %20 = vector.load %arg6[%c0_14, %c0_15] : memref<128x64xbf16, #tpu.memory_space<vmem>>, vector<128x64xbf16>
    %cst_16 = arith.constant dense<0.000000e+00> : vector<16x64xf32>
    %21 = tpu.matmul %19, %20, %cst_16 {dimension_numbers = #tpu.dot_dimension_numbers<[1], [0], [0], [1], [0, 0, 1, 1], [], []>} : vector<16x128xbf16>, vector<128x64xbf16>, vector<16x64xf32> -> vector<16x64xf32>
    %c0_17 = arith.constant 0 : index
    %c0_18 = arith.constant 0 : index
    %22 = vector.load %arg7[%c0_17, %c0_18] : memref<1x64xf32, #tpu.memory_space<vmem>>, vector<1x64xf32>
    %23 = vector.broadcast %22 : vector<1x64xf32> to vector<16x64xf32>
    %24 = arith.addf %21, %23 : vector<16x64xf32>
    %cst_19 = arith.constant 0.000000e+00 : f32
    %25 = vector.broadcast %cst_19 : f32 to vector<16x64xf32>
    %26 = arith.maximumf %24, %25 : vector<16x64xf32>
    %c0_20 = arith.constant 0 : index
    %c0_21 = arith.constant 0 : index
    %27 = vector.load %arg8[%c0_20, %c0_21] : memref<16x64xf32, #tpu.memory_space<vmem>>, vector<16x64xf32>
    tpu.vector_store %arg8[%c0_20, %c0_21], %26 {strides = array<i32>} : memref<16x64xf32, #tpu.memory_space<vmem>>, vector<16x64xf32>,
    return
  }
  func.func @transform_0(%arg0: i32) -> (i32, i32) {
    %c0_i32 = arith.constant 0 : i32
    %c0_i32_0 = arith.constant 0 : i32
    return %arg0, %c0_i32 : i32, i32
  }
  func.func @transform_1(%arg0: i32) -> (i32, i32) {
    %c0_i32 = arith.constant 0 : i32
    %c0_i32_0 = arith.constant 0 : i32
    %c0_i32_1 = arith.constant 0 : i32
    return %c0_i32, %c0_i32_0 : i32, i32
  }
  func.func @transform_2(%arg0: i32) -> (i32, i32) {
    %c0_i32 = arith.constant 0 : i32
    %c0_i32_0 = arith.constant 0 : i32
    %c0_i32_1 = arith.constant 0 : i32
    return %c0_i32, %c0_i32_0 : i32, i32
  }
  func.func @transform_3(%arg0: i32) -> (i32, i32) {
    %c0_i32 = arith.constant 0 : i32
    %c0_i32_0 = arith.constant 0 : i32
    %c0_i32_1 = arith.constant 0 : i32
    return %c0_i32, %c0_i32_0 : i32, i32
  }
  func.func @transform_4(%arg0: i32) -> (i32, i32) {
    %c0_i32 = arith.constant 0 : i32
    %c0_i32_0 = arith.constant 0 : i32
    %c0_i32_1 = arith.constant 0 : i32
    return %c0_i32, %c0_i32_0 : i32, i32
  }
  func.func @transform_5(%arg0: i32) -> (i32, i32) {
    %c0_i32 = arith.constant 0 : i32
    %c0_i32_0 = arith.constant 0 : i32
    %c0_i32_1 = arith.constant 0 : i32
    return %c0_i32, %c0_i32_0 : i32, i32
  }
  func.func @transform_6(%arg0: i32) -> (i32, i32) {
    %c0_i32 = arith.constant 0 : i32
    %c0_i32_0 = arith.constant 0 : i32
    %c0_i32_1 = arith.constant 0 : i32
    return %c0_i32, %c0_i32_0 : i32, i32
  }
  func.func @transform_7(%arg0: i32) -> (i32, i32) {
    %c0_i32 = arith.constant 0 : i32
    %c0_i32_0 = arith.constant 0 : i32
    return %arg0, %c0_i32 : i32, i32
  }
}

</mosaic_0001>

<bundles_post_ra>
// kernel: tpu_custom_call.1
= control target key start
LH: loop header
LB: loop body
LE: loop exit
PB: predicated region body
PF: predicated region fallthrough
CT: control target
= control target key end

     0   :  { %12 = vsyncpa [#allocation3], 0  ;;  %s3503_s0 = inlined_call_operand.vmem [shape: f32[8,784], index: 0, kind: input, shape index: {}]   ;;  %s3504_s1 = inlined_call_operand.hbm [shape: bf16[784,512], index: 1, kind: input, shape index: {}]   ;;  %s3505_s2 = inlined_call_operand.hbm [shape: bf16[512,256], index: 2, kind: input, shape index: {}]   ;;  %s3506_s3 = inlined_call_operand.hbm [shape: bf16[256,128], index: 3, kind: input, shape index: {}]   ;;  %s3507_s4 = inlined_call_operand.vmem [shape: f32[1,128], index: 4, kind: input, shape index: {}]   ;;  %s3508_s5 = inlined_call_operand.vmem [shape: bf16[128,64], index: 5, kind: input, shape index: {}]   ;;  %s3509_s6 = inlined_call_operand.vmem [shape: f32[1,64], index: 6, kind: input, shape index: {}]   ;;  %s3510_s7 = inlined_call_operand.hbm [shape: f32[8,64], index: 7, kind: output, shape index: {}]  }
   0x1   :  { %13 = vsyncpa [#allocation6], 0 }
   0x2   :  { %14 = vsyncpa [#allocation4], 0  ;;  %s3304_s24 = smov [#allocation5]   ;;  %s3210_s28 = scalar_lea.hbm %s3505_s2, 8192 }
   0x3   :  { %s34_s25 = sshll.u32 %s3304_s24, 4  ;;  %p3211_p0 = scmp.ne.s32.totalorder %s3505_s2, %s3210_s28  ;;  %s35_s25 = int_to_ptr.vmem [resolvable:$true] %s34_s25 }
   0x4   :  { %p3214_p1 = scmp.lt.u32.totalorder %s3210_s28, %s3505_s2 }
   0x6   :  { %p3216_p2 = pnand %p3214_p1, %p3211_p0 }
   0x8   :  { %3219 = shalt.err (!%p3216_p2)
}
   0x9   :  { %s3220_s10 = scalar_lea.vmem %s35_s25, 8192  ;;  %p3225_p4 = scmp.lt.s32.totalorder %s35_s25, %s35_s25 }
   0xa   :  { %p3221_p3 = scmp.ne.s32.totalorder %s35_s25, %s3220_s10  ;;  %p3226_p5 = scmp.lt.s32.totalorder %s3220_s10, %s3220_s10 }
   0xc   :  { %p3227_p6 = por %p3226_p5, %p3225_p4 }
   0xe   :  { %p3228_p7 = pnand %p3227_p6, %p3221_p3 }
  0x10   :  { %3231 = shalt.err (!%p3228_p7)
}
  0x11   :  { %s3305_s11 = smov 128   ;;  %s3306_s12 = smov 8  }
  0x12   :  { %40 = dma.hbm_to_vmem [thread:$0]  %s3505_s2, 8192, %s35_s25, [#allocation6], %s3305_s11, %s3305_s11, %s3306_s12  }
  0x13   :  { %s3307_s15 = smov [#allocation2]   ;;  %s3232_s19 = scalar_lea.hbm %s3504_s1, 25088 }
  0x14   :  { %s22_s16 = sshll.u32 %s3307_s15, 4  ;;  %p3233_p8 = scmp.ne.s32.totalorder %s3504_s1, %s3232_s19  ;;  %s23_s16 = int_to_ptr.vmem [resolvable:$true] %s22_s16 }
  0x15   :  { %p3236_p9 = scmp.lt.u32.totalorder %s3232_s19, %s3504_s1 }
  0x17   :  { %p3238_p10 = pnand %p3236_p9, %p3233_p8 }
  0x19   :  { %3241 = shalt.err (!%p3238_p10)
}
  0x1a   :  { %s3242_s24 = scalar_lea.vmem %s23_s16, 25088  ;;  %p3247_p12 = scmp.lt.s32.totalorder %s23_s16, %s23_s16 }
  0x1b   :  { %p3243_p11 = scmp.ne.s32.totalorder %s23_s16, %s3242_s24  ;;  %p3248_p13 = scmp.lt.s32.totalorder %s3242_s24, %s3242_s24 }
  0x1d   :  { %p3249_p0 = por %p3248_p13, %p3247_p12 }
  0x1f   :  { %p3250_p1 = pnand %p3249_p0, %p3243_p11 }
  0x21   :  { %3253 = shalt.err (!%p3250_p1)
}
  0x22   :  { %s3308_s2 = smov 256   ;;  %s3309_s25 = smov 16  }
  0x23   :  { %28 = dma.hbm_to_vmem [thread:$0]  %s3504_s1, 25088, %s23_s16, [#allocation3], %s3308_s2, %s3308_s2, %s3309_s25  }
  0x24   :  { %s3310_s28 = smov [#allocation7]   ;;  %s3254_s9 = scalar_lea.hbm %s3506_s3, 2048 }
  0x25   :  { %s46_s29 = sshll.u32 %s3310_s28, 4  ;;  %p3255_p2 = scmp.ne.s32.totalorder %s3506_s3, %s3254_s9  ;;  %s47_s29 = int_to_ptr.vmem [resolvable:$true] %s46_s29 }
  0x26   :  { %p3258_p3 = scmp.lt.u32.totalorder %s3254_s9, %s3506_s3 }
  0x28   :  { %p3260_p4 = pnand %p3258_p3, %p3255_p2 }
  0x2a   :  { %3263 = shalt.err (!%p3260_p4)
}
  0x2b   :  { %s3264_s17 = scalar_lea.vmem %s47_s29, 2048  ;;  %p3269_p6 = scmp.lt.s32.totalorder %s47_s29, %s47_s29 }
  0x2c   :  { %p3265_p5 = scmp.ne.s32.totalorder %s47_s29, %s3264_s17  ;;  %p3270_p7 = scmp.lt.s32.totalorder %s3264_s17, %s3264_s17 }
  0x2e   :  { %p3271_p8 = por %p3270_p7, %p3269_p6 }
  0x30   :  { %p3272_p9 = pnand %p3271_p8, %p3265_p5 }
  0x32   :  { %3275 = shalt.err (!%p3272_p9)
}
  0x33   :  { %s3311_s1 = smov 64   ;;  %s3312_s16 = smov 4  }
  0x34   :  { %52 = dma.hbm_to_vmem [thread:$0]  %s3506_s3, 2048, %s47_s29, [#allocation6], %s3311_s1, %s3311_s1, %s3312_s16  }
  0x35   :  { %3298 = dma.done.wait [#allocation3], 25088  }
  0x36   :  { %3299 = vsyncadd [#allocation3], 4294942208 }
  0x37   :  { %3300 = dma.done.wait [#allocation6], 10240  }
  0x38   :  { %3301 = vsyncadd [#allocation6], 4294957056  ;;  %v3313_v0 = vmov 0   ;;  %v2796_v1 = vld [vmem:[#allocation2 + $0x4] ss:$16 sps:$4 sm:$0xff]   ;;  %v82_v10 = vld [vmem:[%s3503_s0 + $0x68] sm:$0xff] }
  0x39   :  { %1431 = vmatprep.mubr.bf16.mxu1 %v3313_v0  ;;  %v2798_v2 = vld [vmem:[#allocation2 + $0x604] ss:$16 sps:$4 sm:$0xff]   ;;  %1270 = vmatprep.subr.bf16.mxu0 %v2796_v1  ;;  %v2800_v3 = vld [vmem:[#allocation2] ss:$16 sps:$4 sm:$0xff]   ;;  %v2804_v6 = vld [vmem:[#allocation2 + $0x8] ss:$16 sps:$4 sm:$0xff]  }
  0x3a   :  { %v2801_v4 = vld [vmem:[#allocation2 + $0x600] ss:$16 sps:$4 sm:$0xff]   ;;  %1399 = vmatprep.subr.bf16.mxu1 %v2798_v2  ;;  %v2802_v5 = vld [vmem:[#allocation2 + $0x24] ss:$16 sps:$4 sm:$0xff]   ;;  %1271 = vmatpush1.bf16.msra.mxu0 %v2800_v3  ;;  %v2806_v7 = vld [vmem:[#allocation2 + $0xc] ss:$16 sps:$4 sm:$0xff]  }
  0x3b   :  { %1400 = vmatpush1.bf16.msra.mxu1 %v2801_v4  ;;  %1272 = vmatprep.subr.bf16.mxu0 %v2802_v5  ;;  %v2807_v8 = vld [vmem:[#allocation2 + $0x20] ss:$16 sps:$4 sm:$0xff]   ;;  %vm1266_vm0 = vcmask 130048   ;;  %v2808_v12 = vld [vmem:[#allocation2 + $0x44] ss:$16 sps:$4 sm:$0xff]   ;;  %v70_v51 = vld [vmem:[%s3503_s0 + $0x8] sm:$0xff] }
  0x3c   :  { %v75_v9 = vld [vmem:[%s3503_s0 + $0x30] sm:$0xff]  ;;  %1442 = vmatprep.subr.bf16.mxu1 %v2806_v7  ;;  %v2810_v13 = vld [vmem:[#allocation2 + $0x28] ss:$16 sps:$4 sm:$0xff]   ;;  %v2812_v14 = vld [vmem:[#allocation2 + $0x2c] ss:$16 sps:$4 sm:$0xff]   ;;  %vm3315_vm1 = vmmov 0  }
  0x3d   :  { %v3403_v11 = vpack.c.bf16 %v82_v10, %v75_v9  ;;  %v2813_v15 = vld [vmem:[#allocation2 + $0x40] ss:$16 sps:$4 sm:$0xff]   ;;  %v2814_v16 = vld [vmem:[#allocation2 + $0x64] ss:$16 sps:$4 sm:$0xff]   ;;  %v2818_v17 = vld [vmem:[#allocation2 + $0x4c] ss:$16 sps:$4 sm:$0xff]  }
  0x3e   :  { %1273 = vmatpush1.bf16.msra.mxu0 %v2807_v8  ;;  %v2819_v18 = vld [vmem:[#allocation2 + $0x60] ss:$16 sps:$4 sm:$0xff]   ;;  %v2816_v19 = vld [vmem:[#allocation2 + $0x48] ss:$16 sps:$4 sm:$0xff]   ;;  %v2820_v20 = vld [vmem:[#allocation2 + $0x84] ss:$16 sps:$4 sm:$0xff]  }
  0x3f   :  { %2612 = vmatmul.mubr.msk.bf16.vlgmr.msra.gmra.mrb[0].mxu1 %vm1266_vm0, %v3403_v11  ;;  %1274 = vmatprep.subr.bf16.mxu0 %v2808_v12  ;;  %v2824_v21 = vld [vmem:[#allocation2 + $0x6c] ss:$16 sps:$4 sm:$0xff]   ;;  %v2822_v22 = vld [vmem:[#allocation2 + $0x68] ss:$16 sps:$4 sm:$0xff]   ;;  %v2825_v23 = vld [vmem:[#allocation2 + $0x80] ss:$16 sps:$4 sm:$0xff]  }
  0x40   :  { %1443 = vmatpush1.bf16.msra.mxu1 %v2804_v6  ;;  %v2826_v24 = vld [vmem:[#allocation2 + $0xa4] ss:$16 sps:$4 sm:$0xff]   ;;  %v2830_v25 = vld [vmem:[#allocation2 + $0x8c] ss:$16 sps:$4 sm:$0xff]   ;;  %v2831_v26 = vld [vmem:[#allocation2 + $0xa0] ss:$16 sps:$4 sm:$0xff]  }
  0x41   :  { %1444 = vmatprep.subr.bf16.mxu1 %v2812_v14  ;;  %v2828_v27 = vld [vmem:[#allocation2 + $0x88] ss:$16 sps:$4 sm:$0xff]   ;;  %v2832_v28 = vld [vmem:[#allocation2 + $0xc4] ss:$16 sps:$4 sm:$0xff]   ;;  %v2836_v29 = vld [vmem:[#allocation2 + $0xac] ss:$16 sps:$4 sm:$0xff]  }
  0x42   :  { %1275 = vmatpush1.bf16.msra.mxu0 %v2813_v15  ;;  %v2834_v30 = vld [vmem:[#allocation2 + $0xa8] ss:$16 sps:$4 sm:$0xff]   ;;  %v2837_v31 = vld [vmem:[#allocation2 + $0xc0] ss:$16 sps:$4 sm:$0xff]   ;;  %v2838_v32 = vld [vmem:[#allocation2 + $0xe4] ss:$16 sps:$4 sm:$0xff]  }
  0x43   :  { %1276 = vmatprep.subr.bf16.mxu0 %v2814_v16  ;;  %v2842_v33 = vld [vmem:[#allocation2 + $0xcc] ss:$16 sps:$4 sm:$0xff]   ;;  %v2843_v34 = vld [vmem:[#allocation2 + $0xe0] ss:$16 sps:$4 sm:$0xff]   ;;  %v2840_v35 = vld [vmem:[#allocation2 + $0xc8] ss:$16 sps:$4 sm:$0xff]  }
  0x44   :  { %1445 = vmatpush1.bf16.msra.mxu1 %v2810_v13  ;;  %v2844_v36 = vld [vmem:[#allocation2 + $0x104] ss:$16 sps:$4 sm:$0xff]   ;;  %v2848_v37 = vld [vmem:[#allocation2 + $0xec] ss:$16 sps:$4 sm:$0xff]   ;;  %v2846_v38 = vld [vmem:[#allocation2 + $0xe8] ss:$16 sps:$4 sm:$0xff]  }
  0x45   :  { %1446 = vmatprep.subr.bf16.mxu1 %v2818_v17  ;;  %v2849_v39 = vld [vmem:[#allocation2 + $0x100] ss:$16 sps:$4 sm:$0xff]   ;;  %v2850_v40 = vld [vmem:[#allocation2 + $0x124] ss:$16 sps:$4 sm:$0xff]   ;;  %v2854_v41 = vld [vmem:[#allocation2 + $0x10c] ss:$16 sps:$4 sm:$0xff]  }
  0x46   :  { %1277 = vmatpush1.bf16.msra.mxu0 %v2819_v18  ;;  %v2855_v42 = vld [vmem:[#allocation2 + $0x120] ss:$16 sps:$4 sm:$0xff]   ;;  %v2852_v43 = vld [vmem:[#allocation2 + $0x108] ss:$16 sps:$4 sm:$0xff]   ;;  %v2856_v44 = vld [vmem:[#allocation2 + $0x144] ss:$16 sps:$4 sm:$0xff]  }
  0x47   :  { %1278 = vmatprep.subr.bf16.mxu0 %v2820_v20  ;;  %v2860_v45 = vld [vmem:[#allocation2 + $0x12c] ss:$16 sps:$4 sm:$0xff]   ;;  %v2858_v46 = vld [vmem:[#allocation2 + $0x128] ss:$16 sps:$4 sm:$0xff]   ;;  %v2861_v47 = vld [vmem:[#allocation2 + $0x140] ss:$16 sps:$4 sm:$0xff]  }
  0x48   :  { %1447 = vmatpush1.bf16.msra.mxu1 %v2816_v19  ;;  %v2862_v48 = vld [vmem:[#allocation2 + $0x164] ss:$16 sps:$4 sm:$0xff]   ;;  %v2866_v49 = vld [vmem:[#allocation2 + $0x14c] ss:$16 sps:$4 sm:$0xff]   ;;  %v2864_v50 = vld [vmem:[#allocation2 + $0x148] ss:$16 sps:$4 sm:$0xff]  }
  0x49   :  { %1448 = vmatprep.subr.bf16.mxu1 %v2824_v21  ;;  %v77_v52 = vld [vmem:[%s3503_s0 + $0x40] sm:$0xff]  ;;  %v2872_v56 = vld [vmem:[#allocation2 + $0x16c] ss:$16 sps:$4 sm:$0xff]   ;;  %v2870_v58 = vld [vmem:[#allocation2 + $0x168] ss:$16 sps:$4 sm:$0xff]   ;;  %vm2395_vm2 = vcmask 523264  }
  0x4a   :  { %1279 = vmatpush1.bf16.msra.mxu0 %v2825_v23  ;;  %v2867_v53 = vld [vmem:[#allocation2 + $0x160] ss:$16 sps:$4 sm:$0xff]   ;;  %v84_v54 = vpack.c.bf16 %v77_v52, %v70_v51  ;;  %v2868_v55 = vld [vmem:[#allocation2 + $0x184] ss:$16 sps:$4 sm:$0xff]   ;;  %v2878_v60 = vld [vmem:[#allocation2 + $0x18c] ss:$16 sps:$4 sm:$0xff]  }
  0x4b   :  { %1280 = vmatprep.subr.bf16.mxu0 %v2826_v24  ;;  %v2873_v57 = vld [vmem:[#allocation2 + $0x180] ss:$16 sps:$4 sm:$0xff]   ;;  %v2874_v59 = vld [vmem:[#allocation2 + $0x1a4] ss:$16 sps:$4 sm:$0xff]   ;;  %v2876_v62 = vld [vmem:[#allocation2 + $0x188] ss:$16 sps:$4 sm:$0xff]  }
  0x4c   :  { %1449 = vmatpush1.bf16.msra.mxu1 %v2822_v22  ;;  %1302 = vmatprep.mubr.bf16.mxu0 %v84_v54  ;;  %v2879_v61 = vld [vmem:[#allocation2 + $0x1a0] ss:$16 sps:$4 sm:$0xff]   ;;  %v2880_v63 = vld [vmem:[#allocation2 + $0x1c4] ss:$16 sps:$4 sm:$0xff]   ;;  %v2884_v1 = vld [vmem:[#allocation2 + $0x1ac] ss:$16 sps:$4 sm:$0xff]  }
  0x4d   :  { %1450 = vmatprep.subr.bf16.mxu1 %v2830_v25  ;;  %1474 = vmatprep.mubr.bf16.mxu1 %v84_v54  ;;  %v2885_v2 = vld [vmem:[#allocation2 + $0x1c0] ss:$16 sps:$4 sm:$0xff]   ;;  %v2882_v3 = vld [vmem:[#allocation2 + $0x1a8] ss:$16 sps:$4 sm:$0xff]   ;;  %v2886_v4 = vld [vmem:[#allocation2 + $0x1e4] ss:$16 sps:$4 sm:$0xff]  }
  0x4e   :  { %1281 = vmatpush1.bf16.msra.mxu0 %v2831_v26  ;;  %v2890_v5 = vld [vmem:[#allocation2 + $0x1cc] ss:$16 sps:$4 sm:$0xff]   ;;  %v2891_v6 = vld [vmem:[#allocation2 + $0x1e0] ss:$16 sps:$4 sm:$0xff]   ;;  %v2888_v9 = vld [vmem:[#allocation2 + $0x1c8] ss:$16 sps:$4 sm:$0xff]  }
  0x4f   :  { %1282 = vmatprep.subr.bf16.mxu0 %v2832_v28  ;;  %v69_v7 = vld [vmem:[%s3503_s0] sm:$0xff]  ;;  %v76_v8 = vld [vmem:[%s3503_s0 + $0x38] sm:$0xff] }
  0x50   :  { %1451 = vmatpush1.bf16.msra.mxu1 %v2828_v27  ;;  %v2894_v10 = vld [vmem:[#allocation2 + $0x204] ss:$16 sps:$4 sm:$0xff]   ;;  %v2897_v12 = vld [vmem:[#allocation2 + $0x1ec] ss:$16 sps:$4 sm:$0xff]   ;;  %v83_v13 = vpack.c.bf16 %v76_v8, %v69_v7  ;;  %v2892_v14 = vld [vmem:[#allocation2 + $0x200] ss:$16 sps:$4 sm:$0xff]  }
  0x51   :  { %1452 = vmatprep.subr.bf16.mxu1 %v2836_v29  ;;  %v2895_v15 = vld [vmem:[#allocation2 + $0x1e8] ss:$16 sps:$4 sm:$0xff]   ;;  %v2900_v16 = vld [vmem:[#allocation2 + $0x224] ss:$16 sps:$4 sm:$0xff]   ;;  %v2903_v17 = vld [vmem:[#allocation2 + $0x20c] ss:$16 sps:$4 sm:$0xff]  }
  0x52   :  { %1283 = vmatpush1.bf16.msra.mxu0 %v2837_v31  ;;  %v2898_v18 = vld [vmem:[#allocation2 + $0x220] ss:$16 sps:$4 sm:$0xff]   ;;  %v2901_v19 = vld [vmem:[#allocation2 + $0x208] ss:$16 sps:$4 sm:$0xff]   ;;  %v2906_v20 = vld [vmem:[#allocation2 + $0x244] ss:$16 sps:$4 sm:$0xff]  }
  0x53   :  { %1284 = vmatprep.subr.bf16.mxu0 %v2838_v32  ;;  %v2909_v21 = vld [vmem:[#allocation2 + $0x22c] ss:$16 sps:$4 sm:$0xff]   ;;  %v2904_v22 = vld [vmem:[#allocation2 + $0x240] ss:$16 sps:$4 sm:$0xff]   ;;  %v2907_v23 = vld [vmem:[#allocation2 + $0x228] ss:$16 sps:$4 sm:$0xff]  }
  0x54   :  { %1453 = vmatpush1.bf16.msra.mxu1 %v2834_v30  ;;  %v2912_v24 = vld [vmem:[#allocation2 + $0x264] ss:$16 sps:$4 sm:$0xff]   ;;  %v2915_v25 = vld [vmem:[#allocation2 + $0x24c] ss:$16 sps:$4 sm:$0xff]   ;;  %v2910_v26 = vld [vmem:[#allocation2 + $0x260] ss:$16 sps:$4 sm:$0xff]  }
  0x55   :  { %1454 = vmatprep.subr.bf16.mxu1 %v2842_v33  ;;  %v2913_v27 = vld [vmem:[#allocation2 + $0x248] ss:$16 sps:$4 sm:$0xff]   ;;  %v2918_v28 = vld [vmem:[#allocation2 + $0x284] ss:$16 sps:$4 sm:$0xff]   ;;  %v2921_v29 = vld [vmem:[#allocation2 + $0x26c] ss:$16 sps:$4 sm:$0xff]  }
  0x56   :  { %1285 = vmatpush1.bf16.msra.mxu0 %v2843_v34  ;;  %v2916_v30 = vld [vmem:[#allocation2 + $0x280] ss:$16 sps:$4 sm:$0xff]   ;;  %v2919_v31 = vld [vmem:[#allocation2 + $0x268] ss:$16 sps:$4 sm:$0xff]   ;;  %v2924_v32 = vld [vmem:[#allocation2 + $0x2a4] ss:$16 sps:$4 sm:$0xff]  }
  0x57   :  { %1286 = vmatprep.subr.bf16.mxu0 %v2844_v36  ;;  %v2927_v33 = vld [vmem:[#allocation2 + $0x28c] ss:$16 sps:$4 sm:$0xff]   ;;  %v2922_v34 = vld [vmem:[#allocation2 + $0x2a0] ss:$16 sps:$4 sm:$0xff]   ;;  %v2930_v36 = vld [vmem:[#allocation2 + $0x2c4] ss:$16 sps:$4 sm:$0xff]  }
  0x58   :  { %1455 = vmatpush1.bf16.msra.mxu1 %v2840_v35  ;;  %v2925_v35 = vld [vmem:[#allocation2 + $0x288] ss:$16 sps:$4 sm:$0xff]   ;;  %v2948_v51 = vld [vmem:[#allocation2 + $0x324] ss:$16 sps:$4 sm:$0xff]   ;;  %v2951_v52 = vld [vmem:[#allocation2 + $0x30c] ss:$16 sps:$4 sm:$0xff]  }
  0x59   :  { %1456 = vmatprep.subr.bf16.mxu1 %v2848_v37  ;;  %v2933_v37 = vld [vmem:[#allocation2 + $0x2ac] ss:$16 sps:$4 sm:$0xff]   ;;  %v2949_v54 = vld [vmem:[#allocation2 + $0x308] ss:$16 sps:$4 sm:$0xff]   ;;  %v2978_v8 = vld [vmem:[#allocation2 + $0x3c4] ss:$16 sps:$4 sm:$0xff]  }
  0x5a   :  { %1287 = vmatpush1.bf16.msra.mxu0 %v2849_v39  ;;  %v72_v39 = vld [vmem:[%s3503_s0 + $0x18] sm:$0xff] }
  0x5b   :  { %1288 = vmatprep.subr.bf16.mxu0 %v2850_v40  ;;  %v79_v40 = vld [vmem:[%s3503_s0 + $0x50] sm:$0xff]  ;;  %v2973_v7 = vld [vmem:[#allocation2 + $0x388] ss:$16 sps:$4 sm:$0xff]  }
  0x5c   :  { %1457 = vmatpush1.bf16.msra.mxu1 %v2846_v38  ;;  %v2928_v38 = vld [vmem:[#allocation2 + $0x2c0] ss:$16 sps:$4 sm:$0xff]  }
  0x5d   :  { %1458 = vmatprep.subr.bf16.mxu1 %v2854_v41  ;;  %v2931_v41 = vld [vmem:[#allocation2 + $0x2a8] ss:$16 sps:$4 sm:$0xff]  }
  0x5e   :  { %1289 = vmatpush1.bf16.msra.mxu0 %v2855_v42  ;;  %v86_v42 = vpack.c.bf16 %v79_v40, %v72_v39  ;;  %v3014_v39 = vld [vmem:[#allocation2 + $0x484] ss:$16 sps:$4 sm:$0xff]   ;;  %v3017_v40 = vld [vmem:[#allocation2 + $0x46c] ss:$16 sps:$4 sm:$0xff]  }
  0x5f   :  { %1290 = vmatprep.subr.bf16.mxu0 %v2856_v44  ;;  %v2939_v44 = vld [vmem:[#allocation2 + $0x2cc] ss:$16 sps:$4 sm:$0xff]  }
  0x60   :  { %1459 = vmatpush1.bf16.msra.mxu1 %v2852_v43  ;;  %v2936_v43 = vld [vmem:[#allocation2 + $0x2e4] ss:$16 sps:$4 sm:$0xff]  }
  0x61   :  { %1460 = vmatprep.subr.bf16.mxu1 %v2860_v45  ;;  %v2934_v45 = vld [vmem:[#allocation2 + $0x2e0] ss:$16 sps:$4 sm:$0xff]  }
  0x62   :  { %1291 = vmatpush1.bf16.msra.mxu0 %v2861_v47  ;;  %v2942_v47 = vld [vmem:[#allocation2 + $0x304] ss:$16 sps:$4 sm:$0xff]  }
  0x63   :  { %1292 = vmatprep.subr.bf16.mxu0 %v2862_v48  ;;  %v2945_v48 = vld [vmem:[#allocation2 + $0x2ec] ss:$16 sps:$4 sm:$0xff]  }
  0x64   :  { %1461 = vmatpush1.bf16.msra.mxu1 %v2858_v46  ;;  %v2937_v46 = vld [vmem:[#allocation2 + $0x2c8] ss:$16 sps:$4 sm:$0xff]  }
  0x65   :  { %1462 = vmatprep.subr.bf16.mxu1 %v2866_v49  ;;  %v2940_v49 = vld [vmem:[#allocation2 + $0x300] ss:$16 sps:$4 sm:$0xff]  }
  0x66   :  { %1293 = vmatpush1.bf16.msra.mxu0 %v2867_v53  ;;  %v2946_v53 = vld [vmem:[#allocation2 + $0x320] ss:$16 sps:$4 sm:$0xff]  }
  0x67   :  { %1294 = vmatprep.subr.bf16.mxu0 %v2868_v55  ;;  %v2954_v55 = vld [vmem:[#allocation2 + $0x344] ss:$16 sps:$4 sm:$0xff]  }
  0x68   :  { %1463 = vmatpush1.bf16.msra.mxu1 %v2864_v50  ;;  %v2943_v50 = vld [vmem:[#allocation2 + $0x2e8] ss:$16 sps:$4 sm:$0xff]  }
  0x69   :  { %1464 = vmatprep.subr.bf16.mxu1 %v2872_v56  ;;  %v2957_v56 = vld [vmem:[#allocation2 + $0x32c] ss:$16 sps:$4 sm:$0xff]  }
  0x6a   :  { %1295 = vmatpush1.bf16.msra.mxu0 %v2873_v57  ;;  %v2952_v57 = vld [vmem:[#allocation2 + $0x340] ss:$16 sps:$4 sm:$0xff]  }
  0x6b   :  { %1296 = vmatprep.subr.bf16.mxu0 %v2874_v59  ;;  %v2960_v59 = vld [vmem:[#allocation2 + $0x364] ss:$16 sps:$4 sm:$0xff]  }
  0x6c   :  { %1465 = vmatpush1.bf16.msra.mxu1 %v2870_v58  ;;  %v2955_v58 = vld [vmem:[#allocation2 + $0x328] ss:$16 sps:$4 sm:$0xff]  }
  0x6d   :  { %1466 = vmatprep.subr.bf16.mxu1 %v2878_v60  ;;  %v2963_v60 = vld [vmem:[#allocation2 + $0x34c] ss:$16 sps:$4 sm:$0xff]  }
  0x6e   :  { %1297 = vmatpush1.bf16.msra.mxu0 %v2879_v61  ;;  %v2958_v61 = vld [vmem:[#allocation2 + $0x360] ss:$16 sps:$4 sm:$0xff]  }
  0x6f   :  { %1298 = vmatprep.subr.bf16.mxu0 %v2880_v63  ;;  %v2966_v63 = vld [vmem:[#allocation2 + $0x384] ss:$16 sps:$4 sm:$0xff]  }
  0x70   :  { %1467 = vmatpush1.bf16.msra.mxu1 %v2876_v62  ;;  %v2961_v62 = vld [vmem:[#allocation2 + $0x348] ss:$16 sps:$4 sm:$0xff]  }
  0x71   :  { %1468 = vmatprep.subr.bf16.mxu1 %v2884_v1  ;;  %v2969_v1 = vld [vmem:[#allocation2 + $0x36c] ss:$16 sps:$4 sm:$0xff]  }
  0x72   :  { %1299 = vmatpush1.bf16.msra.mxu0 %v2885_v2  ;;  %v2964_v2 = vld [vmem:[#allocation2 + $0x380] ss:$16 sps:$4 sm:$0xff]  }
  0x73   :  { %1300 = vmatprep.subr.bf16.mxu0 %v2886_v4  ;;  %v2972_v4 = vld [vmem:[#allocation2 + $0x3a4] ss:$16 sps:$4 sm:$0xff]  }
  0x74   :  { %1469 = vmatpush1.bf16.msra.mxu1 %v2882_v3  ;;  %v2967_v3 = vld [vmem:[#allocation2 + $0x368] ss:$16 sps:$4 sm:$0xff]  }
  0x75   :  { %1470 = vmatprep.subr.bf16.mxu1 %v2890_v5  ;;  %v2975_v5 = vld [vmem:[#allocation2 + $0x38c] ss:$16 sps:$4 sm:$0xff]  }
  0x76   :  { %1301 = vmatpush1.bf16.msra.mxu0 %v2891_v6  ;;  %v2970_v6 = vld [vmem:[#allocation2 + $0x3a0] ss:$16 sps:$4 sm:$0xff]  }
  0x77   :  { %1313 = vmatprep.subr.bf16.mxu0 %v2894_v10  ;;  %v2976_v10 = vld [vmem:[#allocation2 + $0x3c0] ss:$16 sps:$4 sm:$0xff]  }
  0x78   :  { %1471 = vmatpush1.bf16.msra.mxu1 %v2888_v9  ;;  %v2981_v9 = vld [vmem:[#allocation2 + $0x3ac] ss:$16 sps:$4 sm:$0xff]  }
  0x79   :  { %1472 = vmatprep.subr.bf16.mxu1 %v2897_v12  ;;  %1303 = vmatmul.mubr.bf16.vlgmr.msra.gmra.mrb[0].mxu0 %v83_v13  ;;  %v2979_v12 = vld [vmem:[#allocation2 + $0x3a8] ss:$16 sps:$4 sm:$0xff]  }
  0x7a   :  { %1314 = vmatpush1.bf16.msra.mxu0 %v2892_v14  ;;  %1345 = vmatprep.mubr.bf16.mxu0 %v86_v42  ;;  %v2987_v14 = vld [vmem:[#allocation2 + $0x3cc] ss:$16 sps:$4 sm:$0xff]  }
  0x7b   :  { %1315 = vmatprep.subr.bf16.mxu0 %v2900_v16  ;;  %v71_v16 = vld [vmem:[%s3503_s0 + $0x10] sm:$0xff] }
  0x7c   :  { %1473 = vmatpush1.bf16.msra.mxu1 %v2895_v15  ;;  %v2982_v15 = vld [vmem:[#allocation2 + $0x3e0] ss:$16 sps:$4 sm:$0xff]  }
  0x7d   :  { %1485 = vmatprep.subr.bf16.mxu1 %v2903_v17  ;;  %v78_v17 = vld [vmem:[%s3503_s0 + $0x48] sm:$0xff] }
  0x7e   :  { %1316 = vmatpush1.bf16.msra.mxu0 %v2898_v18  ;;  %v2985_v18 = vld [vmem:[#allocation2 + $0x3c8] ss:$16 sps:$4 sm:$0xff]  }
  0x7f   :  { %1475 = vmatmul.mubr.bf16.vlgmr.msra.gmra.mrb[4].mxu1 %v83_v13  ;;  %1317 = vmatprep.subr.bf16.mxu0 %v2906_v20  ;;  %v2984_v13 = vld [vmem:[#allocation2 + $0x3e4] ss:$16 sps:$4 sm:$0xff]   ;;  %v2993_v20 = vld [vmem:[#allocation2 + $0x3ec] ss:$16 sps:$4 sm:$0xff]  }
  0x80   :  { %1486 = vmatpush1.bf16.msra.mxu1 %v2901_v19  ;;  %1517 = vmatprep.mubr.bf16.mxu1 %v86_v42  ;;  %v2990_v19 = vld [vmem:[#allocation2 + $0x404] ss:$16 sps:$4 sm:$0xff]   ;;  %v3015_v42 = vld [vmem:[#allocation2 + $0x468] ss:$16 sps:$4 sm:$0xff]  }
  0x81   :  { %1487 = vmatprep.subr.bf16.mxu1 %v2909_v21  ;;  %v85_v21 = vpack.c.bf16 %v78_v17, %v71_v16  ;;  %v3069_v16 = vld [vmem:[#allocation2 + $0x588] ss:$16 sps:$4 sm:$0xff]   ;;  %v3074_v17 = vld [vmem:[#allocation2 + $0x5c4] ss:$16 sps:$4 sm:$0xff]  }
  0x82   :  { %1318 = vmatpush1.bf16.msra.mxu0 %v2904_v22  ;;  %v2988_v22 = vld [vmem:[#allocation2 + $0x400] ss:$16 sps:$4 sm:$0xff]  }
  0x83   :  { %1319 = vmatprep.subr.bf16.mxu0 %v2912_v24  ;;  %v2996_v24 = vld [vmem:[#allocation2 + $0x424] ss:$16 sps:$4 sm:$0xff]  }
  0x84   :  { %1488 = vmatpush1.bf16.msra.mxu1 %v2907_v23  ;;  %v2991_v23 = vld [vmem:[#allocation2 + $0x3e8] ss:$16 sps:$4 sm:$0xff]  }
  0x85   :  { %1489 = vmatprep.subr.bf16.mxu1 %v2915_v25  ;;  %v2999_v25 = vld [vmem:[#allocation2 + $0x40c] ss:$16 sps:$4 sm:$0xff]  }
  0x86   :  { %1320 = vmatpush1.bf16.msra.mxu0 %v2910_v26  ;;  %v74_v26 = vld [vmem:[%s3503_s0 + $0x28] sm:$0xff] }
  0x87   :  { %1321 = vmatprep.subr.bf16.mxu0 %v2918_v28  ;;  %v2994_v28 = vld [vmem:[#allocation2 + $0x420] ss:$16 sps:$4 sm:$0xff]  }
  0x88   :  { %1490 = vmatpush1.bf16.msra.mxu1 %v2913_v27  ;;  %v81_v27 = vld [vmem:[%s3503_s0 + $0x60] sm:$0xff] }
  0x89   :  { %1491 = vmatprep.subr.bf16.mxu1 %v2921_v29  ;;  %v88_v29 = vpack.c.bf16 %v81_v27, %v74_v26  ;;  %v3081_v26 = vld [vmem:[#allocation2 + $0x5c8] ss:$16 sps:$4 sm:$0xff]   ;;  %v3092_v27 = vld [vmem:[#allocation5 + $0x4] ss:$8 sps:$4 sm:$0xff]  }
  0x8a   :  { %1322 = vmatpush1.bf16.msra.mxu0 %v2916_v30  ;;  %v2997_v30 = vld [vmem:[#allocation2 + $0x408] ss:$16 sps:$4 sm:$0xff]  }
  0x8b   :  { %1323 = vmatprep.subr.bf16.mxu0 %v2924_v32  ;;  %v3005_v32 = vld [vmem:[#allocation2 + $0x42c] ss:$16 sps:$4 sm:$0xff]  }
  0x8c   :  { %1492 = vmatpush1.bf16.msra.mxu1 %v2919_v31  ;;  %v3002_v31 = vld [vmem:[#allocation2 + $0x444] ss:$16 sps:$4 sm:$0xff]  }
  0x8d   :  { %1493 = vmatprep.subr.bf16.mxu1 %v2927_v33  ;;  %v3000_v33 = vld [vmem:[#allocation2 + $0x440] ss:$16 sps:$4 sm:$0xff]  }
  0x8e   :  { %1324 = vmatpush1.bf16.msra.mxu0 %v2922_v34  ;;  %v3003_v34 = vld [vmem:[#allocation2 + $0x428] ss:$16 sps:$4 sm:$0xff]  }
  0x8f   :  { %1325 = vmatprep.subr.bf16.mxu0 %v2930_v36  ;;  %v3011_v36 = vld [vmem:[#allocation2 + $0x44c] ss:$16 sps:$4 sm:$0xff]  }
  0x90   :  { %1494 = vmatpush1.bf16.msra.mxu1 %v2925_v35  ;;  %v3008_v35 = vld [vmem:[#allocation2 + $0x464] ss:$16 sps:$4 sm:$0xff]  }
  0x91   :  { %1495 = vmatprep.subr.bf16.mxu1 %v2933_v37  ;;  %v3006_v37 = vld [vmem:[#allocation2 + $0x460] ss:$16 sps:$4 sm:$0xff]  }
  0x92   :  { %1326 = vmatpush1.bf16.msra.mxu0 %v2928_v38  ;;  %v3009_v38 = vld [vmem:[#allocation2 + $0x448] ss:$16 sps:$4 sm:$0xff]  }
  0x93   :  { %1327 = vmatprep.subr.bf16.mxu0 %v2936_v43  ;;  %v3020_v43 = vld [vmem:[#allocation2 + $0x4a4] ss:$16 sps:$4 sm:$0xff]  }
  0x94   :  { %1496 = vmatpush1.bf16.msra.mxu1 %v2931_v41  ;;  %v3012_v41 = vld [vmem:[#allocation2 + $0x480] ss:$16 sps:$4 sm:$0xff]  }
  0x95   :  { %1497 = vmatprep.subr.bf16.mxu1 %v2939_v44  ;;  %v3023_v44 = vld [vmem:[#allocation2 + $0x48c] ss:$16 sps:$4 sm:$0xff]  }
  0x96   :  { %1328 = vmatpush1.bf16.msra.mxu0 %v2934_v45  ;;  %v3018_v45 = vld [vmem:[#allocation2 + $0x4a0] ss:$16 sps:$4 sm:$0xff]  }
  0x97   :  { %1329 = vmatprep.subr.bf16.mxu0 %v2942_v47  ;;  %v3026_v47 = vld [vmem:[#allocation2 + $0x4c4] ss:$16 sps:$4 sm:$0xff]  }
  0x98   :  { %1498 = vmatpush1.bf16.msra.mxu1 %v2937_v46  ;;  %v3021_v46 = vld [vmem:[#allocation2 + $0x488] ss:$16 sps:$4 sm:$0xff]  }
  0x99   :  { %1499 = vmatprep.subr.bf16.mxu1 %v2945_v48  ;;  %v3029_v48 = vld [vmem:[#allocation2 + $0x4ac] ss:$16 sps:$4 sm:$0xff]  }
  0x9a   :  { %1330 = vmatpush1.bf16.msra.mxu0 %v2940_v49  ;;  %v3024_v49 = vld [vmem:[#allocation2 + $0x4c0] ss:$16 sps:$4 sm:$0xff]  }
  0x9b   :  { %1331 = vmatprep.subr.bf16.mxu0 %v2948_v51  ;;  %v3032_v51 = vld [vmem:[#allocation2 + $0x4e4] ss:$16 sps:$4 sm:$0xff]  }
  0x9c   :  { %1500 = vmatpush1.bf16.msra.mxu1 %v2943_v50  ;;  %v3027_v50 = vld [vmem:[#allocation2 + $0x4a8] ss:$16 sps:$4 sm:$0xff]  }
  0x9d   :  { %1501 = vmatprep.subr.bf16.mxu1 %v2951_v52  ;;  %v3035_v52 = vld [vmem:[#allocation2 + $0x4cc] ss:$16 sps:$4 sm:$0xff]  }
  0x9e   :  { %1332 = vmatpush1.bf16.msra.mxu0 %v2946_v53  ;;  %v3030_v53 = vld [vmem:[#allocation2 + $0x4e0] ss:$16 sps:$4 sm:$0xff]  }
  0x9f   :  { %1333 = vmatprep.subr.bf16.mxu0 %v2954_v55  ;;  %v3038_v55 = vld [vmem:[#allocation2 + $0x504] ss:$16 sps:$4 sm:$0xff]  }
  0xa0   :  { %1502 = vmatpush1.bf16.msra.mxu1 %v2949_v54  ;;  %v3033_v54 = vld [vmem:[#allocation2 + $0x4c8] ss:$16 sps:$4 sm:$0xff]  }
  0xa1   :  { %1503 = vmatprep.subr.bf16.mxu1 %v2957_v56  ;;  %v3041_v56 = vld [vmem:[#allocation2 + $0x4ec] ss:$16 sps:$4 sm:$0xff]  }
  0xa2   :  { %1334 = vmatpush1.bf16.msra.mxu0 %v2952_v57  ;;  %v3036_v57 = vld [vmem:[#allocation2 + $0x500] ss:$16 sps:$4 sm:$0xff]  }
  0xa3   :  { %1335 = vmatprep.subr.bf16.mxu0 %v2960_v59  ;;  %v3044_v59 = vld [vmem:[#allocation2 + $0x524] ss:$16 sps:$4 sm:$0xff]  }
  0xa4   :  { %1504 = vmatpush1.bf16.msra.mxu1 %v2955_v58  ;;  %v3039_v58 = vld [vmem:[#allocation2 + $0x4e8] ss:$16 sps:$4 sm:$0xff]  }
  0xa5   :  { %1505 = vmatprep.subr.bf16.mxu1 %v2963_v60  ;;  %v3047_v60 = vld [vmem:[#allocation2 + $0x50c] ss:$16 sps:$4 sm:$0xff]  }
  0xa6   :  { %1336 = vmatpush1.bf16.msra.mxu0 %v2958_v61  ;;  %v3042_v61 = vld [vmem:[#allocation2 + $0x520] ss:$16 sps:$4 sm:$0xff]  }
  0xa7   :  { %1337 = vmatprep.subr.bf16.mxu0 %v2966_v63  ;;  %v3050_v63 = vld [vmem:[#allocation2 + $0x544] ss:$16 sps:$4 sm:$0xff]  }
  0xa8   :  { %1506 = vmatpush1.bf16.msra.mxu1 %v2961_v62  ;;  %v3045_v62 = vld [vmem:[#allocation2 + $0x508] ss:$16 sps:$4 sm:$0xff]  }
  0xa9   :  { %1507 = vmatprep.subr.bf16.mxu1 %v2969_v1  ;;  %v3053_v1 = vld [vmem:[#allocation2 + $0x52c] ss:$16 sps:$4 sm:$0xff]  }
  0xaa   :  { %1338 = vmatpush1.bf16.msra.mxu0 %v2964_v2  ;;  %v3048_v2 = vld [vmem:[#allocation2 + $0x540] ss:$16 sps:$4 sm:$0xff]  }
  0xab   :  { %1339 = vmatprep.subr.bf16.mxu0 %v2972_v4  ;;  %v3056_v4 = vld [vmem:[#allocation2 + $0x564] ss:$16 sps:$4 sm:$0xff]  }
  0xac   :  { %1508 = vmatpush1.bf16.msra.mxu1 %v2967_v3  ;;  %v3051_v3 = vld [vmem:[#allocation2 + $0x528] ss:$16 sps:$4 sm:$0xff]  }
  0xad   :  { %1509 = vmatprep.subr.bf16.mxu1 %v2975_v5  ;;  %v3059_v5 = vld [vmem:[#allocation2 + $0x54c] ss:$16 sps:$4 sm:$0xff]  }
  0xae   :  { %1340 = vmatpush1.bf16.msra.mxu0 %v2970_v6  ;;  %v3054_v6 = vld [vmem:[#allocation2 + $0x560] ss:$16 sps:$4 sm:$0xff]  }
  0xaf   :  { %1341 = vmatprep.subr.bf16.mxu0 %v2978_v8  ;;  %v3062_v8 = vld [vmem:[#allocation2 + $0x584] ss:$16 sps:$4 sm:$0xff]  }
  0xb0   :  { %1510 = vmatpush1.bf16.msra.mxu1 %v2973_v7  ;;  %v3057_v7 = vld [vmem:[#allocation2 + $0x548] ss:$16 sps:$4 sm:$0xff]  }
  0xb1   :  { %1511 = vmatprep.subr.bf16.mxu1 %v2981_v9  ;;  %v3065_v9 = vld [vmem:[#allocation2 + $0x56c] ss:$16 sps:$4 sm:$0xff]  }
  0xb2   :  { %1342 = vmatpush1.bf16.msra.mxu0 %v2976_v10  ;;  %v3060_v10 = vld [vmem:[#allocation2 + $0x580] ss:$16 sps:$4 sm:$0xff]  }
  0xb3   :  { %1343 = vmatprep.subr.bf16.mxu0 %v2984_v13  ;;  %v3068_v13 = vld [vmem:[#allocation2 + $0x5a4] ss:$16 sps:$4 sm:$0xff]  }
  0xb4   :  { %1512 = vmatpush1.bf16.msra.mxu1 %v2979_v12  ;;  %v3063_v12 = vld [vmem:[#allocation2 + $0x568] ss:$16 sps:$4 sm:$0xff]  }
  0xb5   :  { %1513 = vmatprep.subr.bf16.mxu1 %v2987_v14  ;;  %v3071_v14 = vld [vmem:[#allocation2 + $0x58c] ss:$16 sps:$4 sm:$0xff]  }
  0xb6   :  { %1344 = vmatpush1.bf16.msra.mxu0 %v2982_v15  ;;  %v3066_v15 = vld [vmem:[#allocation2 + $0x5a0] ss:$16 sps:$4 sm:$0xff]  }
  0xb7   :  { %1356 = vmatprep.subr.bf16.mxu0 %v2990_v19  ;;  %v3072_v19 = vld [vmem:[#allocation2 + $0x5c0] ss:$16 sps:$4 sm:$0xff]  }
  0xb8   :  { %1514 = vmatpush1.bf16.msra.mxu1 %v2985_v18  ;;  %v3077_v18 = vld [vmem:[#allocation2 + $0x5ac] ss:$16 sps:$4 sm:$0xff]  }
  0xb9   :  { %1515 = vmatprep.subr.bf16.mxu1 %v2993_v20  ;;  %1346 = vmatmul.mubr.bf16.vlgmr.msra.gmra.mrb[0].mxu0 %v85_v21  ;;  %v3075_v20 = vld [vmem:[#allocation2 + $0x5a8] ss:$16 sps:$4 sm:$0xff]  }
  0xba   :  { %1357 = vmatpush1.bf16.msra.mxu0 %v2988_v22  ;;  %1388 = vmatprep.mubr.bf16.mxu0 %v88_v29  ;;  %v3083_v22 = vld [vmem:[#allocation2 + $0x5cc] ss:$16 sps:$4 sm:$0xff]  }
  0xbb   :  { %1358 = vmatprep.subr.bf16.mxu0 %v2996_v24  ;;  %v73_v24 = vld [vmem:[%s3503_s0 + $0x20] sm:$0xff] }
  0xbc   :  { %1516 = vmatpush1.bf16.msra.mxu1 %v2991_v23  ;;  %v3078_v23 = vld [vmem:[#allocation2 + $0x5e0] ss:$16 sps:$4 sm:$0xff]  }
  0xbd   :  { %1528 = vmatprep.subr.bf16.mxu1 %v2999_v25  ;;  %v80_v25 = vld [vmem:[%s3503_s0 + $0x58] sm:$0xff] }
  0xbe   :  { %1359 = vmatpush1.bf16.msra.mxu0 %v2994_v28  ;;  %v3086_v28 = vld [vmem:[#allocation2 + $0x5ec] ss:$16 sps:$4 sm:$0xff]  }
  0xbf   :  { %1518 = vmatmul.mubr.bf16.vlgmr.msra.gmra.mrb[4].mxu1 %v85_v21  ;;  %1360 = vmatprep.subr.bf16.mxu0 %v3002_v31  ;;  %v3080_v21 = vld [vmem:[#allocation2 + $0x5e4] ss:$16 sps:$4 sm:$0xff]   ;;  %v3084_v31 = vld [vmem:[#allocation2 + $0x5e8] ss:$16 sps:$4 sm:$0xff]  }
  0xc0   :  { %1529 = vmatpush1.bf16.msra.mxu1 %v2997_v30  ;;  %1560 = vmatprep.mubr.bf16.mxu1 %v88_v29  ;;  %v87_v29 = vpack.c.bf16 %v80_v25, %v73_v24  ;;  %v3090_v30 = vld [vmem:[#allocation5] ss:$8 sps:$4 sm:$0xff]  }
  0xc1   :  { %1530 = vmatprep.subr.bf16.mxu1 %v3005_v32  ;;  %v3095_v32 = vld [vmem:[#allocation5 + $0x14] ss:$8 sps:$4 sm:$0xff]  }
  0xc2   :  { %1361 = vmatpush1.bf16.msra.mxu0 %v3000_v33  ;;  %v3089_v33 = vld [vmem:[#allocation2 + $0x60c] ss:$16 sps:$4 sm:$0xff]  }
  0xc3   :  { %1362 = vmatprep.subr.bf16.mxu0 %v3008_v35  ;;  %v3087_v35 = vld [vmem:[#allocation2 + $0x608] ss:$16 sps:$4 sm:$0xff]  }
  0xc4   :  { %1531 = vmatpush1.bf16.msra.mxu1 %v3003_v34  ;;  %v3093_v34 = vld [vmem:[#allocation5 + $0x10] ss:$8 sps:$4 sm:$0xff]  }
  0xc5   :  { %1532 = vmatprep.subr.bf16.mxu1 %v3011_v36  ;;  %v3098_v36 = vld [vmem:[#allocation5 + $0x24] ss:$8 sps:$4 sm:$0xff]  }
  0xc6   :  { %1363 = vmatpush1.bf16.msra.mxu0 %v3006_v37  ;;  %v3096_v37 = vld [vmem:[#allocation5 + $0x20] ss:$8 sps:$4 sm:$0xff]  }
  0xc7   :  { %1364 = vmatprep.subr.bf16.mxu0 %v3014_v39  ;;  %v3099_v39 = vld [vmem:[#allocation5 + $0x30] ss:$8 sps:$4 sm:$0xff]  }
  0xc8   :  { %1533 = vmatpush1.bf16.msra.mxu1 %v3009_v38  ;;  %v3101_v38 = vld [vmem:[#allocation5 + $0x34] ss:$8 sps:$4 sm:$0xff]  }
  0xc9   :  { %1534 = vmatprep.subr.bf16.mxu1 %v3017_v40  ;;  %v3104_v40 = vld [vmem:[#allocation5 + $0x44] ss:$8 sps:$4 sm:$0xff]  }
  0xca   :  { %1365 = vmatpush1.bf16.msra.mxu0 %v3012_v41  ;;  %v3102_v41 = vld [vmem:[#allocation5 + $0x40] ss:$8 sps:$4 sm:$0xff]  }
  0xcb   :  { %1366 = vmatprep.subr.bf16.mxu0 %v3020_v43  ;;  %v3105_v43 = vld [vmem:[#allocation5 + $0x50] ss:$8 sps:$4 sm:$0xff]  }
  0xcc   :  { %1535 = vmatpush1.bf16.msra.mxu1 %v3015_v42  ;;  %v3107_v42 = vld [vmem:[#allocation5 + $0x54] ss:$8 sps:$4 sm:$0xff]  }
  0xcd   :  { %1536 = vmatprep.subr.bf16.mxu1 %v3023_v44  ;;  %v3110_v44 = vld [vmem:[#allocation5 + $0x64] ss:$8 sps:$4 sm:$0xff]  }
  0xce   :  { %1367 = vmatpush1.bf16.msra.mxu0 %v3018_v45  ;;  %v3108_v45 = vld [vmem:[#allocation5 + $0x60] ss:$8 sps:$4 sm:$0xff]  }
  0xcf   :  { %1368 = vmatprep.subr.bf16.mxu0 %v3026_v47 }
  0xd0   :  { %1537 = vmatpush1.bf16.msra.mxu1 %v3021_v46 }
  0xd1   :  { %1538 = vmatprep.subr.bf16.mxu1 %v3029_v48  ;;  %v3111_v48 = vld [vmem:[#allocation5 + $0x70] ss:$8 sps:$4 sm:$0xff]  }
  0xd2   :  { %1369 = vmatpush1.bf16.msra.mxu0 %v3024_v49 }
  0xd3   :  { %1370 = vmatprep.subr.bf16.mxu0 %v3032_v51 }
  0xd4   :  { %1539 = vmatpush1.bf16.msra.mxu1 %v3027_v50  ;;  %v3116_v50 = vld [vmem:[#allocation5 + $0x84] ss:$8 sps:$4 sm:$0xff]  }
  0xd5   :  { %1540 = vmatprep.subr.bf16.mxu1 %v3035_v52  ;;  %v3119_v52 = vld [vmem:[#allocation5 + $0x94] ss:$8 sps:$4 sm:$0xff]  }
  0xd6   :  { %1371 = vmatpush1.bf16.msra.mxu0 %v3030_v53  ;;  %v3117_v53 = vld [vmem:[#allocation5 + $0x90] ss:$8 sps:$4 sm:$0xff]  }
  0xd7   :  { %1372 = vmatprep.subr.bf16.mxu0 %v3038_v55  ;;  %v3120_v55 = vld [vmem:[#allocation5 + $0xa0] ss:$8 sps:$4 sm:$0xff]  }
  0xd8   :  { %1541 = vmatpush1.bf16.msra.mxu1 %v3033_v54  ;;  %v3122_v54 = vld [vmem:[#allocation5 + $0xa4] ss:$8 sps:$4 sm:$0xff]  }
  0xd9   :  { %1542 = vmatprep.subr.bf16.mxu1 %v3041_v56  ;;  %v3125_v56 = vld [vmem:[#allocation5 + $0xb4] ss:$8 sps:$4 sm:$0xff]  }
  0xda   :  { %1373 = vmatpush1.bf16.msra.mxu0 %v3036_v57  ;;  %v3123_v57 = vld [vmem:[#allocation5 + $0xb0] ss:$8 sps:$4 sm:$0xff]  }
  0xdb   :  { %1374 = vmatprep.subr.bf16.mxu0 %v3044_v59  ;;  %v3126_v59 = vld [vmem:[#allocation5 + $0xc0] ss:$8 sps:$4 sm:$0xff]  }
  0xdc   :  { %1543 = vmatpush1.bf16.msra.mxu1 %v3039_v58  ;;  %v3128_v58 = vld [vmem:[#allocation5 + $0xc4] ss:$8 sps:$4 sm:$0xff]  }
  0xdd   :  { %1544 = vmatprep.subr.bf16.mxu1 %v3047_v60  ;;  %v3131_v60 = vld [vmem:[#allocation5 + $0xd4] ss:$8 sps:$4 sm:$0xff]  }
  0xde   :  { %1375 = vmatpush1.bf16.msra.mxu0 %v3042_v61  ;;  %v3129_v61 = vld [vmem:[#allocation5 + $0xd0] ss:$8 sps:$4 sm:$0xff]  }
  0xdf   :  { %1376 = vmatprep.subr.bf16.mxu0 %v3050_v63  ;;  %v3132_v63 = vld [vmem:[#allocation5 + $0xe0] ss:$8 sps:$4 sm:$0xff]  }
  0xe0   :  { %1545 = vmatpush1.bf16.msra.mxu1 %v3045_v62  ;;  %v3134_v62 = vld [vmem:[#allocation5 + $0xe4] ss:$8 sps:$4 sm:$0xff]  }
  0xe1   :  { %1546 = vmatprep.subr.bf16.mxu1 %v3053_v1  ;;  %v3137_v1 = vld [vmem:[#allocation5 + $0xf4] ss:$8 sps:$4 sm:$0xff]  }
  0xe2   :  { %1377 = vmatpush1.bf16.msra.mxu0 %v3048_v2  ;;  %v3135_v2 = vld [vmem:[#allocation5 + $0xf0] ss:$8 sps:$4 sm:$0xff]  }
  0xe3   :  { %1378 = vmatprep.subr.bf16.mxu0 %v3056_v4  ;;  %v3186_v4 = vld [vmem:[#allocation7 + $0x40] sm:$0xff]  }
  0xe4   :  { %1547 = vmatpush1.bf16.msra.mxu1 %v3051_v3  ;;  %v3140_v3 = vld [vmem:[#allocation5 + $0x104] ss:$8 sps:$4 sm:$0xff]  }
  0xe5   :  { %1548 = vmatprep.subr.bf16.mxu1 %v3059_v5  ;;  %v3187_v5 = vld [vmem:[#allocation7] sm:$0xff]  }
  0xe6   :  { %1379 = vmatpush1.bf16.msra.mxu0 %v3054_v6  ;;  %v3188_v6 = vld [vmem:[#allocation7 + $0x48] sm:$0xff]  }
  0xe7   :  { %1380 = vmatprep.subr.bf16.mxu0 %v3062_v8  ;;  %v3190_v8 = vld [vmem:[#allocation7 + $0x50] sm:$0xff]  }
  0xe8   :  { %1549 = vmatpush1.bf16.msra.mxu1 %v3057_v7  ;;  %v3189_v7 = vld [vmem:[#allocation7 + $0x8] sm:$0xff]  }
  0xe9   :  { %1550 = vmatprep.subr.bf16.mxu1 %v3065_v9  ;;  %v3191_v9 = vld [vmem:[#allocation7 + $0x10] sm:$0xff]  }
  0xea   :  { %1381 = vmatpush1.bf16.msra.mxu0 %v3060_v10  ;;  %v3192_v10 = vld [vmem:[#allocation7 + $0x58] sm:$0xff]  }
  0xeb   :  { %1382 = vmatprep.subr.bf16.mxu0 %v3068_v13  ;;  %v3194_v13 = vld [vmem:[#allocation7 + $0x60] sm:$0xff]  }
  0xec   :  { %1551 = vmatpush1.bf16.msra.mxu1 %v3063_v12  ;;  %v3193_v12 = vld [vmem:[#allocation7 + $0x18] sm:$0xff]  }
  0xed   :  { %1552 = vmatprep.subr.bf16.mxu1 %v3071_v14  ;;  %v3195_v14 = vld [vmem:[#allocation7 + $0x20] sm:$0xff]  }
  0xee   :  { %1383 = vmatpush1.bf16.msra.mxu0 %v3066_v15  ;;  %v3196_v15 = vld [vmem:[#allocation7 + $0x68] sm:$0xff]  }
  0xef   :  { %1384 = vmatprep.subr.bf16.mxu0 %v3074_v17 }
  0xf0   :  { %1553 = vmatpush1.bf16.msra.mxu1 %v3069_v16  ;;  %v3197_v16 = vld [vmem:[#allocation7 + $0x28] sm:$0xff]  }
  0xf1   :  { %1554 = vmatprep.subr.bf16.mxu1 %v3077_v18 }
  0xf2   :  { %1385 = vmatpush1.bf16.msra.mxu0 %v3072_v19 }
  0xf3   :  { %1386 = vmatprep.subr.bf16.mxu0 %v3080_v21 }
  0xf4   :  { %1555 = vmatpush1.bf16.msra.mxu1 %v3075_v20 }
  0xf5   :  { %1556 = vmatprep.subr.bf16.mxu1 %v3083_v22 }
  0xf6   :  { %1387 = vmatpush1.bf16.msra.mxu0 %v3078_v23 }
  0xf7   :  { %2010 = vmatprep.subr.bf16.mxu0 %v3092_v27 }
  0xf8   :  { %1557 = vmatpush1.bf16.msra.mxu1 %v3081_v26 }
  0xf9   :  { %1558 = vmatprep.subr.bf16.mxu1 %v3086_v28  ;;  %1389 = vmatmul.mubr.bf16.vlgmr.msra.gmra.mrb[0].mxu0 %v87_v29 }
  0xfa   :  { %2011 = vmatpush1.bf16.msra.mxu0 %v3090_v30 }
  0xfb   :  { %2012 = vmatprep.subr.bf16.mxu0 %v3095_v32  ;;  %v3143_v32 = vld [vmem:[#allocation5 + $0x114] ss:$8 sps:$4 sm:$0xff]  }
  0xfc   :  { %1559 = vmatpush1.bf16.msra.mxu1 %v3084_v31  ;;  %v3138_v31 = vld [vmem:[#allocation5 + $0x100] ss:$8 sps:$4 sm:$0xff]  }
  0xfd   :  { %1571 = vmatprep.subr.bf16.mxu1 %v3089_v33  ;;  %v3141_v33 = vld [vmem:[#allocation5 + $0x110] ss:$8 sps:$4 sm:$0xff]  }
  0xfe   :  { %2013 = vmatpush1.bf16.msra.mxu0 %v3093_v34  ;;  %v3146_v34 = vld [vmem:[#allocation5 + $0x124] ss:$8 sps:$4 sm:$0xff]  }
  0xff   :  { %1561 = vmatmul.mubr.bf16.vlgmr.msra.gmra.mrb[4].mxu1 %v87_v29  ;;  %2014 = vmatprep.subr.bf16.mxu0 %v3098_v36 }
 0x100   :  { %1572 = vmatpush1.bf16.msra.mxu1 %v3087_v35  ;;  %1603 = vmatprep.mubr.bf16.mxu1 %v3313_v0  ;;  %v3113_v0 = vld [vmem:[#allocation5 + $0x74] ss:$8 sps:$4 sm:$0xff]   ;;  %v3144_v35 = vld [vmem:[#allocation5 + $0x120] ss:$8 sps:$4 sm:$0xff]  }
 0x101   :  { %2704 = vmatprep.subr.bf16.mxu1 %v3186_v4  ;;  %v3180_v4 = vld [vmem:[#allocation5 + $0x1e0] ss:$8 sps:$4 sm:$0xff]  }
 0x102   :  { %2015 = vmatpush1.bf16.msra.mxu0 %v3096_v37  ;;  %v3149_v37 = vld [vmem:[#allocation5 + $0x134] ss:$8 sps:$4 sm:$0xff]  }
 0x103   :  { %2016 = vmatprep.subr.bf16.mxu0 %v3101_v38 }
 0x106   :  { %2017 = vmatpush1.bf16.msra.mxu0 %v3099_v39 }
 0x107   :  { %2018 = vmatprep.subr.bf16.mxu0 %v3104_v40 }
 0x10a   :  { %2019 = vmatpush1.bf16.msra.mxu0 %v3102_v41 }
 0x10b   :  { %2613 = vmatmul.mubr.msk.bf16.vlgmr.msra.gmra.mrb[4].mxu1 %vm1266_vm0, %v3403_v11  ;;  %2020 = vmatprep.subr.bf16.mxu0 %v3107_v42  ;;  %v3114_v11 = vld [vmem:[#allocation5 + $0x80] ss:$8 sps:$4 sm:$0xff]  }
 0x10c   :  { %2705 = vmatpush3.bf16.msra.mxu1 %v3187_v5  ;;  %v3185_v5 = vld [vmem:[#allocation5 + $0x1f4] ss:$8 sps:$4 sm:$0xff]  }
 0x10d   :  { %2706 = vmatprep.subr.bf16.mxu1 %v3188_v6  ;;  %v3183_v6 = vld [vmem:[#allocation5 + $0x1f0] ss:$8 sps:$4 sm:$0xff]  }
 0x10e   :  { %2021 = vmatpush1.bf16.msra.mxu0 %v3105_v43  ;;  %v3147_v43 = vld [vmem:[#allocation5 + $0x130] ss:$8 sps:$4 sm:$0xff]  }
 0x10f   :  { %2022 = vmatprep.subr.bf16.mxu0 %v3110_v44 }
 0x110   :  { %2707 = vmatpush3.bf16.msra.mxu1 %v3189_v7  ;;  %v3198_v7 = vld [vmem:[#allocation7 + $0x70] sm:$0xff]  }
 0x111   :  { %2708 = vmatprep.subr.bf16.mxu1 %v3190_v8  ;;  %v3199_v8 = vld [vmem:[#allocation7 + $0x30] sm:$0xff]  }
 0x112   :  { %v3446_v46 = vpop.f32.mrb[0].mxu1  ;;  %2023 = vmatpush1.bf16.msra.mxu0 %v3108_v45 }
 0x113   :  { %v3448_v47 = vpop.f32.mrb[1].mxu1  ;;  %2024 = vmatprep.subr.bf16.mxu0 %v3113_v0  ;;  %v3152_v0 = vld [vmem:[#allocation5 + $0x144] ss:$8 sps:$4 sm:$0xff]  }
 0x114   :  { %v3450_v49 = vpop.f32.mrb[2].mxu1  ;;  %2709 = vmatpush3.bf16.msra.mxu1 %v3191_v9  ;;  %v3200_v9 = vld [vmem:[#allocation7 + $0x78] sm:$0xff]  }
 0x115   :  { %v3452_v51 = vpop.f32.mrb[3].mxu1  ;;  %2710 = vmatprep.subr.bf16.mxu1 %v3192_v10  ;;  %v3201_v10 = vld [vmem:[#allocation7 + $0x38] sm:$0xff]  }
 0x116   :  { %2025 = vmatpush1.bf16.msra.mxu0 %v3111_v48  ;;  %v3150_v48 = vld [vmem:[#allocation5 + $0x140] ss:$8 sps:$4 sm:$0xff]  }
 0x117   :  { %2026 = vmatprep.subr.bf16.mxu0 %v3116_v50  ;;  %v3153_v50 = vld [vmem:[#allocation5 + $0x150] ss:$8 sps:$4 sm:$0xff]  }
 0x118   :  { %2711 = vmatpush3.bf16.msra.mxu1 %v3193_v12  ;;  %v3314_v12 = vmov 0.0  }
 0x119   :  { %2712 = vmatprep.subr.bf16.mxu1 %v3194_v13 }
 0x11a   :  { %2027 = vmatpush1.bf16.msra.mxu0 %v3114_v11  ;;  %v3156_v11 = vld [vmem:[#allocation5 + $0x160] ss:$8 sps:$4 sm:$0xff]  }
 0x11b   :  { %2028 = vmatprep.subr.bf16.mxu0 %v3119_v52  ;;  %v3161_v52 = vld [vmem:[#allocation5 + $0x174] ss:$8 sps:$4 sm:$0xff]  }
 0x11c   :  { %2713 = vmatpush3.bf16.msra.mxu1 %v3195_v14 }
 0x11d   :  { %2714 = vmatprep.subr.bf16.mxu1 %v3196_v15 }
 0x11e   :  { %2029 = vmatpush1.bf16.msra.mxu0 %v3117_v53  ;;  %v3159_v53 = vld [vmem:[#allocation5 + $0x170] ss:$8 sps:$4 sm:$0xff]  }
 0x11f   :  { %2030 = vmatprep.subr.bf16.mxu0 %v3122_v54  ;;  %v3164_v54 = vld [vmem:[#allocation5 + $0x184] ss:$8 sps:$4 sm:$0xff]  }
 0x120   :  { %2715 = vmatpush3.bf16.msra.mxu1 %v3197_v16 }
 0x121   :  { %2716 = vmatprep.subr.bf16.mxu1 %v3198_v7 }
 0x122   :  { %2031 = vmatpush1.bf16.msra.mxu0 %v3120_v55  ;;  %v3162_v55 = vld [vmem:[#allocation5 + $0x180] ss:$8 sps:$4 sm:$0xff]  }
 0x123   :  { %2032 = vmatprep.subr.bf16.mxu0 %v3125_v56  ;;  %v3167_v56 = vld [vmem:[#allocation5 + $0x194] ss:$8 sps:$4 sm:$0xff]  }
 0x124   :  { %2717 = vmatpush3.bf16.msra.mxu1 %v3199_v8 }
 0x125   :  { %2718 = vmatprep.subr.bf16.mxu1 %v3200_v9 }
 0x126   :  { %2033 = vmatpush1.bf16.msra.mxu0 %v3123_v57  ;;  %v3165_v57 = vld [vmem:[#allocation5 + $0x190] ss:$8 sps:$4 sm:$0xff]  }
 0x127   :  { %2034 = vmatprep.subr.bf16.mxu0 %v3128_v58  ;;  %v3170_v58 = vld [vmem:[#allocation5 + $0x1a4] ss:$8 sps:$4 sm:$0xff]  }
 0x128   :  { %2719 = vmatpush3.bf16.msra.mxu1 %v3201_v10 }
 0x129   :  { %2735 = vmatprep.subr.bf16.mxu1 %v3314_v12 }
 0x12a   :  { %2035 = vmatpush1.bf16.msra.mxu0 %v3126_v59  ;;  %v3168_v59 = vld [vmem:[#allocation5 + $0x1a0] ss:$8 sps:$4 sm:$0xff]  }
 0x12b   :  { %2036 = vmatprep.subr.bf16.mxu0 %v3131_v60  ;;  %v3173_v60 = vld [vmem:[#allocation5 + $0x1b4] ss:$8 sps:$4 sm:$0xff]  }
 0x12e   :  { %2037 = vmatpush1.bf16.msra.mxu0 %v3129_v61  ;;  %v3171_v61 = vld [vmem:[#allocation5 + $0x1b0] ss:$8 sps:$4 sm:$0xff]  }
 0x12f   :  { %2038 = vmatprep.subr.bf16.mxu0 %v3134_v62  ;;  %v3176_v62 = vld [vmem:[#allocation5 + $0x1c4] ss:$8 sps:$4 sm:$0xff]  }
 0x132   :  { %2039 = vmatpush1.bf16.msra.mxu0 %v3132_v63  ;;  %v3174_v63 = vld [vmem:[#allocation5 + $0x1c0] ss:$8 sps:$4 sm:$0xff]  }
 0x133   :  { %2040 = vmatprep.subr.bf16.mxu0 %v3137_v1  ;;  %v3179_v1 = vld [vmem:[#allocation5 + $0x1d4] ss:$8 sps:$4 sm:$0xff]  }
 0x136   :  { %2041 = vmatpush1.bf16.msra.mxu0 %v3135_v2  ;;  %v3177_v2 = vld [vmem:[#allocation5 + $0x1d0] ss:$8 sps:$4 sm:$0xff]  }
 0x137   :  { %2053 = vmatprep.subr.bf16.mxu0 %v3140_v3  ;;  %v3182_v3 = vld [vmem:[#allocation5 + $0x1e4] ss:$8 sps:$4 sm:$0xff]  }
 0x1cc   :  { %v1390_v17 = vpop.f32.mrb[0].mxu0 }
 0x1cd   :  { %v2755_v18 = vadd.f32 %v3446_v46, %v1390_v17  ;;  %v1392_v19 = vpop.f32.mrb[1].mxu0 }
 0x1ce   :  { %v2756_v20 = vadd.f32 %v3448_v47, %v1392_v19  ;;  %v1394_v21 = vpop.f32.mrb[2].mxu0 }
 0x1cf   :  { %v2757_v22 = vadd.f32 %v3450_v49, %v1394_v21  ;;  %v1396_v23 = vpop.f32.mrb[3].mxu0  ;;  %v1614_v25 = vmax.f32 %v2755_v18, 0.0  ;;  %v3155_v49 = vld [vmem:[#allocation5 + $0x154] ss:$8 sps:$4 sm:$0xff]  }
 0x1d0   :  { %v2758_v24 = vadd.f32 %v3452_v51, %v1396_v23  ;;  %v1615_v27 = vmax.f32 %v2756_v20, 0.0  ;;  %v3158_v51 = vld [vmem:[#allocation5 + $0x164] ss:$8 sps:$4 sm:$0xff]  }
 0x1d1   :  { %v1618_v26 = vmax.f32 %v2757_v22, 0.0  ;;  %v3202_v23 = vld [vmem:[%s3508_s5] sm:$0xff]  }
 0x1d2   :  { %v1619_v28 = vmax.f32 %v2758_v24, 0.0  ;;  %v3203_v24 = vld [vmem:[%s3508_s5 + $0x8] sm:$0xff]  }
 0x1d3   :  { %v1622_v29 = vpack.c.bf16 %v1618_v26, %v1614_v25  ;;  %v3204_v25 = vld [vmem:[%s3508_s5 + $0x10] sm:$0xff]   ;;  %v3205_v26 = vld [vmem:[%s3508_s5 + $0x18] sm:$0xff]  }
 0x1d4   :  { %v1623_v30 = vpack.c.bf16 %v1619_v28, %v1615_v27  ;;  %v3206_v27 = vld [vmem:[%s3508_s5 + $0x20] sm:$0xff]   ;;  %v3207_v28 = vld [vmem:[%s3508_s5 + $0x28] sm:$0xff]  }
 0x1d6   :  { %2042 = vmatprep.mubr.bf16.mxu0 %v1623_v30  ;;  %v3209_v30 = vld [vmem:[%s3508_s5 + $0x38] sm:$0xff]  }
 0x1d7   :  { %2043 = vmatmul.mubr.bf16.vlgmr.msra.gmra.mrb[4].mxu0 %v1622_v29  ;;  %v3208_v29 = vld [vmem:[%s3508_s5 + $0x30] sm:$0xff]  }
 0x1d8   :  { %2054 = vmatpush1.bf16.msra.mxu0 %v3138_v31 }
 0x1d9   :  { %2055 = vmatprep.subr.bf16.mxu0 %v3143_v32  ;;  %v2678_v32 = vld [vmem:[%s3507_s4] ss:$0 sm:$0xff] }
 0x1dc   :  { %2056 = vmatpush1.bf16.msra.mxu0 %v3141_v33 }
 0x1dd   :  { %2057 = vmatprep.subr.bf16.mxu0 %v3146_v34 }
 0x1de   :  { %v1605_v36 = vpop.f32.mrb[4].mxu1 }
 0x1df   :  { %v1607_v38 = vpop.f32.mrb[5].mxu1  ;;  %v1616_v40 = vmax.f32 %v1605_v36, 0.0 }
 0x1e0   :  { %v1609_v39 = vpop.f32.mrb[6].mxu1  ;;  %2058 = vmatpush1.bf16.msra.mxu0 %v3144_v35  ;;  %v1617_v44 = vmax.f32 %v1607_v38, 0.0 }
 0x1e1   :  { %v1620_v41 = vmax.f32 %v1609_v39, 0.0  ;;  %v1611_v42 = vpop.f32.mrb[7].mxu1  ;;  %2059 = vmatprep.subr.bf16.mxu0 %v3149_v37 }
 0x1e2   :  { %v1621_v45 = vmax.f32 %v1611_v42, 0.0 }
 0x1e3   :  { %v1624_v46 = vpack.c.bf16 %v1620_v41, %v1616_v40 }
 0x1e4   :  { %v1625_v47 = vpack.c.bf16 %v1621_v45, %v1617_v44  ;;  %2060 = vmatpush1.bf16.msra.mxu0 %v3147_v43  ;;  %v2695_v43 = vld [vmem:[%s3509_s6] ss:$0 sm:$0xff] }
 0x1e5   :  { %2061 = vmatprep.subr.bf16.mxu0 %v3152_v0 }
 0x1e6   :  { %2085 = vmatprep.mubr.bf16.mxu0 %v1625_v47 }
 0x1e8   :  { %2062 = vmatpush1.bf16.msra.mxu0 %v3150_v48 }
 0x1e9   :  { %2063 = vmatprep.subr.bf16.mxu0 %v3155_v49 }
 0x1ec   :  { %2064 = vmatpush1.bf16.msra.mxu0 %v3153_v50 }
 0x1ed   :  { %2065 = vmatprep.subr.bf16.mxu0 %v3158_v51 }
 0x1f0   :  { %2066 = vmatpush1.bf16.msra.mxu0 %v3156_v11 }
 0x1f1   :  { %2067 = vmatprep.subr.bf16.mxu0 %v3161_v52 }
 0x1f4   :  { %2068 = vmatpush1.bf16.msra.mxu0 %v3159_v53 }
 0x1f5   :  { %2069 = vmatprep.subr.bf16.mxu0 %v3164_v54 }
 0x1f8   :  { %2070 = vmatpush1.bf16.msra.mxu0 %v3162_v55 }
 0x1f9   :  { %2071 = vmatprep.subr.bf16.mxu0 %v3167_v56 }
 0x1fc   :  { %2072 = vmatpush1.bf16.msra.mxu0 %v3165_v57 }
 0x1fd   :  { %2073 = vmatprep.subr.bf16.mxu0 %v3170_v58 }
 0x200   :  { %2074 = vmatpush1.bf16.msra.mxu0 %v3168_v59 }
 0x201   :  { %2075 = vmatprep.subr.bf16.mxu0 %v3173_v60 }
 0x204   :  { %2076 = vmatpush1.bf16.msra.mxu0 %v3171_v61 }
 0x205   :  { %2077 = vmatprep.subr.bf16.mxu0 %v3176_v62 }
 0x208   :  { %2078 = vmatpush1.bf16.msra.mxu0 %v3174_v63 }
 0x209   :  { %2079 = vmatprep.subr.bf16.mxu0 %v3179_v1 }
 0x20c   :  { %2080 = vmatpush1.bf16.msra.mxu0 %v3177_v2 }
 0x20d   :  { %2081 = vmatprep.subr.bf16.mxu0 %v3182_v3 }
 0x210   :  { %2082 = vmatpush1.bf16.msra.mxu0 %v3180_v4 }
 0x211   :  { %2083 = vmatprep.subr.bf16.mxu0 %v3185_v5 }
 0x214   :  { %2084 = vmatpush1.bf16.msra.mxu0 %v3183_v6 }
 0x217   :  { %2086 = vmatmul.mubr.bf16.vlgmr.msra.gmra.mrb[4].mxu0 %v1624_v46 }
 0x2ea   :  { %v2087_v13 = vpop.f32.mrb[4].mxu0 }
 0x2eb   :  { %v2089_v14 = vpop.f32.mrb[5].mxu0  ;;  %v2096_v16 = vmax.f32 %v2087_v13, 0.0 }
 0x2ec   :  { %v2091_v15 = vpop.f32.mrb[6].mxu0  ;;  %v2097_v19 = vmax.f32 %v2089_v14, 0.0 }
 0x2ed   :  { %v2098_v17 = vmax.f32 %v2091_v15, 0.0  ;;  %v2093_v18 = vpop.f32.mrb[7].mxu0 }
 0x2ee   :  { %v2099_v20 = vmax.f32 %v2093_v18, 0.0 }
 0x2ef   :  { %v2100_v21 = vpack.c.bf16 %v2098_v17, %v2096_v16 }
 0x2f0   :  { %v2101_v22 = vpack.c.bf16 %v2099_v20, %v2097_v19 }
 0x2f2   :  { %2269 = vmatprep.mubr.bf16.mxu1 %v2101_v22 }
 0x2f3   :  { %2270 = vmatmul.mubr.bf16.vlgmr.msra.gmra.mrb[8].mxu1 %v2100_v21 }
 0x2f4   :  { %2736 = vmatpush3.bf16.msra.mxu1 %v3202_v23  ;;  %2751 = vmatprep.mubr.msk.bf16.mxu1 %vm3315_vm1, %v3314_v12 }
 0x2f5   :  { %2737 = vmatprep.subr.bf16.mxu1 %v3314_v12 }
 0x2f8   :  { %2738 = vmatpush3.bf16.msra.mxu1 %v3203_v24 }
 0x2f9   :  { %2739 = vmatprep.subr.bf16.mxu1 %v3314_v12 }
 0x2fc   :  { %2740 = vmatpush3.bf16.msra.mxu1 %v3204_v25 }
 0x2fd   :  { %2741 = vmatprep.subr.bf16.mxu1 %v3314_v12 }
 0x300   :  { %2742 = vmatpush3.bf16.msra.mxu1 %v3205_v26 }
 0x301   :  { %2743 = vmatprep.subr.bf16.mxu1 %v3314_v12 }
 0x304   :  { %2744 = vmatpush3.bf16.msra.mxu1 %v3206_v27 }
 0x305   :  { %2745 = vmatprep.subr.bf16.mxu1 %v3314_v12 }
 0x308   :  { %2746 = vmatpush3.bf16.msra.mxu1 %v3207_v28 }
 0x309   :  { %2747 = vmatprep.subr.bf16.mxu1 %v3314_v12 }
 0x30c   :  { %2748 = vmatpush3.bf16.msra.mxu1 %v3208_v29 }
 0x30d   :  { %2749 = vmatprep.subr.bf16.mxu1 %v3314_v12 }
 0x310   :  { %2750 = vmatpush3.bf16.msra.mxu1 %v3209_v30 }
 0x3c6   :  { %v2720_v31 = vpop.f32.mrb[8].mxu1 }
 0x3c7   :  { %v2721_v33 = vpop.f32.mrb[9].mxu1 }
 0x3c8   :  { %v2722_v34 = vadd.f32 %v2721_v33, %v2720_v31  ;;  %v2723_v35 = vpop.f32.mrb[10].mxu1 }
 0x3c9   :  { %v2724_v36 = vpop.f32.mrb[11].mxu1 }
 0x3ca   :  { %v2272_v37 = vadd.f32 %v2722_v34, %v2678_v32  ;;  %v2725_v38 = vadd.f32 %v2724_v36, %v2723_v35 }
 0x3cc   :  { %v2275_v39 = vadd.f32 %v2725_v38, %v2678_v32  ;;  %v2278_v40 = vmax.f32 %v2272_v37, 0.0 }
 0x3ce   :  { %v2279_v41 = vmax.f32 %v2275_v39, 0.0 }
 0x3d0   :  { %v2280_v42 = vpack.c.bf16 %v2279_v41, %v2278_v40 }
 0x3d2   :  { %2752 = vmatmul.mubr.bf16.vlgmr.msra.gmra.mrb[12].mxu1 %v2280_v42 }
 0x4a5   :  { %v2386_v44 = vpop.f32.mrb[12].mxu1 }
 0x4a6   :  { %v2387_v45 = vadd.f32 %v2695_v43, %v2386_v44  ;;  %v2753_v0 = vpop.f32.mrb[13].mxu1 }
 0x4a7   :  { %v2389_v46 = vpop.f32.mrb[14].mxu1 }
 0x4a8   :  { %v2393_v47 = vmax.f32 %v2387_v45, 0.0  ;;  %v2390_v48 = vadd.f32 %v2695_v43, %v2389_v46  ;;  %v2754_v49 = vpop.f32.mrb[15].mxu1 }
 0x4aa   :  { %2396 = vst.msk [vmem:[#allocation8] sm:$0xff] %vm2395_vm2, %v2393_v47  ;;  %v2394_v50 = vmax.f32 %v2390_v48, 0.0 }
 0x4ac   :  { %2397 = vst.msk [vmem:[#allocation8 + $0x8] sm:$0xff] %vm2395_vm2, %v2394_v50 }
 0x4ad   :  { %2402 = vsyncadd [#allocation4], 128  ;;  %s3316_s4 = smov [#allocation8]  }
 0x4ae   :  { %s2403_s18 = sshll.u32 %s3316_s4, 4  ;;  %s2404_s18 = int_to_ptr.vmem [resolvable:$true] %s2403_s18 }
 0x4af   :  { %s3276_s19 = scalar_lea.vmem %s2404_s18, 128  ;;  %s3280_s3 = scalar_lea.vmem %s2404_s18, 256 }
 0x4b0   :  { %p3277_p10 = scmp.ne.s32.totalorder %s2404_s18, %s3276_s19  ;;  %p3281_p11 = scmp.lt.s32.totalorder %s2404_s18, %s2404_s18 }
 0x4b1   :  { %p3282_p12 = scmp.lt.s32.totalorder %s3280_s3, %s3276_s19 }
 0x4b3   :  { %p3283_p13 = por %p3282_p12, %p3281_p11 }
 0x4b5   :  { %p3284_p0 = pnand %p3283_p13, %p3277_p10 }
 0x4b7   :  { %3287 = shalt.err (!%p3284_p0)
}
 0x4b8   :  { %s3288_s21 = scalar_lea.hbm %s3510_s7, 128 }
 0x4b9   :  { %p3289_p1 = scmp.ne.s32.totalorder %s3510_s7, %s3288_s21  ;;  %p3292_p2 = scmp.lt.u32.totalorder %s3288_s21, %s3510_s7 }
 0x4bb   :  { %p3294_p3 = pnand %p3292_p2, %p3289_p1 }
 0x4bd   :  { %3297 = shalt.err (!%p3294_p3)
}
 0x4be   :  { %2409 = dma.vmem_to_hbm [thread:$0]  %s2404_s18, 128, %s3510_s7, [#allocation4], %s3305_s11, %s3305_s11, %s3306_s12  }
 0x4bf   :  { %3302 = dma.done.wait [#allocation4], 256  }
 0x4c0   :  { %3303 = vsyncadd [#allocation4], 4294967040 }
 0x4c1   :  { %2413 = vsyncpa [#allocation3], 1 }
 0x4c2   :  { %2414 = vsyncpa [#allocation6], 1 }
 0x4c3   :  { %2415 = vsyncpa [#allocation4], 1 }

</bundles_post_ra>
